<compile_context>
chip_gen: v7x
topology: tpu7x:2x2x1
jax: 0.10.0
libtpu: 0.0.40
codegen_flags: <defaults>
</compile_context>

<pallas_src>
import functools
import math

import jax
import jax.numpy as jnp
from jax.experimental import pallas as pl
from jax.experimental.pallas import tpu as pltpu

LANE = 128


def _round_up(x, m):
    return (x + m - 1) // m * m


def tiny_attention_kernel(xq_ref, xkv_ref, wq_ref, bq_ref, wk_ref, bk_ref,
                          wv_ref, bv_ref, wp_ref, bp_ref, out_ref, *, n_real):
    B, tn, d_in_p = xq_ref.shape
    n_p = xkv_ref.shape[1]
    d_attn_p = wq_ref.shape[1]
    d_out_p = wp_ref.shape[1]

    xq = xq_ref[...]      # (B, tn,  d_in_p) bf16 — current q-row tile
    xkv = xkv_ref[...]    # (B, n_p, d_in_p) bf16 — full (padded) sequence

    # Projections: flatten (B, n) so the MXU sees M = B * tile rows instead of
    # B tiny matmuls.  The 1/sqrt(d_attn) scale is already folded into wq/bq.
    q = jnp.dot(xq.reshape(B * tn, d_in_p), wq_ref[...],
                preferred_element_type=jnp.float32) + bq_ref[...]
    k = jnp.dot(xkv.reshape(B * n_p, d_in_p), wk_ref[...],
                preferred_element_type=jnp.float32) + bk_ref[...]
    v = jnp.dot(xkv.reshape(B * n_p, d_in_p), wv_ref[...],
                preferred_element_type=jnp.float32) + bv_ref[...]

    q = q.reshape(B, tn, d_attn_p)
    k = k.reshape(B, n_p, d_attn_p)
    v = v.reshape(B, n_p, d_attn_p)

    # Padded sequence rows of x are zero, but the linear bias would make v
    # nonzero there; zero them so padded m positions contribute nothing to the
    # m-sum below.  (k needs no mask: its padded-row logits only ever multiply
    # these zeroed v rows.)
    if n_p > n_real:
        row = jax.lax.broadcasted_iota(jnp.int32, (B, n_p, d_attn_p), 1)
        v = jnp.where(row < n_real, v, 0.0)

    qb = q.astype(jnp.bfloat16)
    kb = k.astype(jnp.bfloat16)
    vb = v.astype(jnp.bfloat16)

    # logits = einsum('bnd,bmd->bnm', q, k) * rsqrt(d_attn)   (scale pre-folded)
    logits = jnp.einsum('bnd,bmd->bnm', qb, kb,
                        preferred_element_type=jnp.float32)

    # nn.Softmax(dim=0): softmax over the BATCH axis of (b, n, m).
    mx = jnp.max(logits, axis=0, keepdims=True)
    e = jnp.exp(logits - mx)
    s = jnp.sum(e, axis=0, keepdims=True)
    a = e * pl.reciprocal(s, approx=True)   # EUP reciprocal, divide-free

    ctx = jnp.einsum('bnm,bmd->bnd', a.astype(jnp.bfloat16), vb,
                     preferred_element_type=jnp.float32)

    out = jnp.dot(ctx.reshape(B * tn, d_attn_p).astype(jnp.bfloat16),
                  wp_ref[...], preferred_element_type=jnp.float32) + bp_ref[...]
    out_ref[...] = out.reshape(B, tn, d_out_p).astype(out_ref.dtype)


def tiny_attention(x, wqkv, bqkv, wproj, bproj, *, tile_n=LANE):
    B, N, d_in = x.shape
    d_attn = wqkv.shape[1] // 3
    d_out = wproj.shape[1]

    d_in_p = _round_up(d_in, LANE)
    d_attn_p = _round_up(d_attn, LANE)
    d_out_p = _round_up(d_out, LANE)
    tn = tile_n
    n_p = _round_up(N, tn)   # also lane-densifies the m dim of the logits

    scale = 1.0 / math.sqrt(d_attn)

    # Split the fused QKV params host-side -> lane-aligned per-projection refs,
    # and fold the attention scale into the q projection (O(d_in*d_attn) once,
    # instead of O(B*N*N) on the logits every call).
    wq, wk, wv = wqkv[:, :d_attn], wqkv[:, d_attn:2 * d_attn], wqkv[:, 2 * d_attn:]
    bq, bk, bv = bqkv[:, :d_attn], bqkv[:, d_attn:2 * d_attn], bqkv[:, 2 * d_attn:]
    wq = wq * scale
    bq = bq * scale

    def pad2(a, r, c):
        return jnp.pad(a, ((0, r - a.shape[0]), (0, c - a.shape[1])))

    bf16 = jnp.bfloat16
    wq_p = pad2(wq, d_in_p, d_attn_p).astype(bf16)
    wk_p = pad2(wk, d_in_p, d_attn_p).astype(bf16)
    wv_p = pad2(wv, d_in_p, d_attn_p).astype(bf16)
    wp_p = pad2(wproj, d_attn_p, d_out_p).astype(bf16)
    bq_p = pad2(bq, 1, d_attn_p)          # biases stay f32 (post-accumulate add)
    bk_p = pad2(bk, 1, d_attn_p)
    bv_p = pad2(bv, 1, d_attn_p)
    bp_p = pad2(bproj, 1, d_out_p)
    x_p = jnp.pad(x, ((0, 0), (0, n_p - N), (0, d_in_p - d_in))).astype(bf16)

    kernel = functools.partial(tiny_attention_kernel, n_real=N)

    # TODO(synk): for very long sequences also tile the k/v (m) axis with a
    # second grid dimension and accumulate the m-sum, so the full-sequence k/v
    # block does not have to be VMEM-resident.
    out_p = pl.pallas_call(
        kernel,
        out_shape=jax.ShapeDtypeStruct((B, n_p, d_out_p), x.dtype),
        grid_spec=pltpu.PrefetchScalarGridSpec(
            num_scalar_prefetch=0,
            grid=(n_p // tn,),
            in_specs=[
                pl.BlockSpec((B, tn, d_in_p), lambda i: (0, i, 0)),    # q rows tile
                pl.BlockSpec((B, n_p, d_in_p), lambda i: (0, 0, 0)),   # full seq for k/v
                pl.BlockSpec((d_in_p, d_attn_p), lambda i: (0, 0)),    # Wq (pre-scaled)
                pl.BlockSpec((1, d_attn_p), lambda i: (0, 0)),         # bq (pre-scaled)
                pl.BlockSpec((d_in_p, d_attn_p), lambda i: (0, 0)),    # Wk
                pl.BlockSpec((1, d_attn_p), lambda i: (0, 0)),         # bk
                pl.BlockSpec((d_in_p, d_attn_p), lambda i: (0, 0)),    # Wv
                pl.BlockSpec((1, d_attn_p), lambda i: (0, 0)),         # bv
                pl.BlockSpec((d_attn_p, d_out_p), lambda i: (0, 0)),   # Wproj
                pl.BlockSpec((1, d_out_p), lambda i: (0, 0)),          # bproj
            ],
            out_specs=pl.BlockSpec((B, tn, d_out_p), lambda i: (0, i, 0)),
        ),
        compiler_params=pltpu.CompilerParams(
            dimension_semantics=("parallel",),        # megacore split on v7x
            vmem_limit_bytes=32 * 1024 * 1024,        # safe on v5e/v6e/v7x
        ),
    )(x_p, x_p, wq_p, bq_p, wk_p, bk_p, wv_p, bv_p, wp_p, bp_p)

    return out_p[:, :N, :d_out]


def tiny_attention_ref_f32(x, wqkv, bqkv, wproj, bproj):
    """Exact f32 math of the PyTorch module (including the dim=0 softmax)."""
    d_attn = wqkv.shape[1] // 3
    qkv = x @ wqkv + bqkv[0]
    q, k, v = jnp.split(qkv, 3, axis=-1)
    w = jnp.einsum('bnd,bmd->bnm', q, k)
    ws = w * jax.lax.rsqrt(jnp.float32(d_attn))
    a = jax.nn.softmax(ws, axis=0)
    ctx = jnp.einsum('bnm,bmd->bnd', a, v)
    return ctx @ wproj + bproj[0]


def tiny_attention_ref_bf16(x, wqkv, bqkv, wproj, bproj):
    """Mirrors the kernel's bf16 MXU quantization points (f32 accumulation)."""
    d_attn = wqkv.shape[1] // 3
    scale = 1.0 / math.sqrt(d_attn)
    bf16, f32 = jnp.bfloat16, jnp.float32
    wq, wk, wv = jnp.split(wqkv, 3, axis=1)
    bq, bk, bv = jnp.split(bqkv, 3, axis=1)
    xb = x.astype(bf16)
    q = jnp.einsum('bnd,de->bne', xb, (wq * scale).astype(bf16),
                   preferred_element_type=f32) + bq * scale
    k = jnp.einsum('bnd,de->bne', xb, wk.astype(bf16),
                   preferred_element_type=f32) + bk
    v = jnp.einsum('bnd,de->bne', xb, wv.astype(bf16),
                   preferred_element_type=f32) + bv
    w = jnp.einsum('bnd,bmd->bnm', q.astype(bf16), k.astype(bf16),
                   preferred_element_type=f32)
    a = jax.nn.softmax(w, axis=0)
    ctx = jnp.einsum('bnm,bmd->bnd', a.astype(bf16), v.astype(bf16),
                     preferred_element_type=f32)
    return jnp.einsum('bnd,de->bne', ctx.astype(bf16), wproj.astype(bf16),
                      preferred_element_type=f32) + bproj


if __name__ == "__main__":
    B, N = 2, 8
    d_in, d_attn = 32, 64
    d_out = d_in  # d_out=None -> d_out = d_in

    key = jax.random.PRNGKey(0)
    kx, kw1, kb1, kw2, kb2 = jax.random.split(key, 5)

    x = jax.random.normal(kx, (B, N, d_in), dtype=jnp.float32)
    # Deterministic synthetic parameter init (shapes match the nn.Linear layers).
    wqkv = jax.random.normal(kw1, (d_in, 3 * d_attn), dtype=jnp.float32) * (1.0 / jnp.sqrt(d_in))
    bqkv = jax.random.normal(kb1, (1, 3 * d_attn), dtype=jnp.float32) * 0.01
    wproj = jax.random.normal(kw2, (d_attn, d_out), dtype=jnp.float32) * (1.0 / jnp.sqrt(d_attn))
    bproj = jax.random.normal(kb2, (1, d_out), dtype=jnp.float32) * 0.01

    out = jax.block_until_ready(tiny_attention(x, wqkv, bqkv, wproj, bproj))
    assert out.shape == (B, N, d_out), out.shape

    # Tight check vs. a reference that applies the same bf16 MXU quantization as
    # the kernel (tolerance also covers the approximate EUP reciprocal).
    ref_bf16 = tiny_attention_ref_bf16(x, wqkv, bqkv, wproj, bproj)
    err_bf16 = float(jnp.max(jnp.abs(out - ref_bf16)))
    assert err_bf16 < 3e-2, err_bf16

    # Loose semantic check vs. the exact f32 module math (tolerance loosened for
    # bf16 MXU operands, as anticipated in the perf review).
    ref_f32 = tiny_attention_ref_f32(x, wqkv, bqkv, wproj, bproj)
    err_f32 = float(jnp.max(jnp.abs(out - ref_f32)))
    assert err_f32 < 1e-1, err_f32

    print("KERNEL_OK")
</pallas_src>

<mosaic_0001>
module attributes {stable_mosaic.version = 11 : i64} {
  func.func @tiny_attention_kernel(%arg0: i32, %arg1: memref<2x128x128xbf16, #tpu.memory_space<vmem>>, %arg2: memref<2x128x128xbf16, #tpu.memory_space<vmem>>, %arg3: memref<128x128xbf16, #tpu.memory_space<vmem>>, %arg4: memref<1x128xf32, #tpu.memory_space<vmem>>, %arg5: memref<128x128xbf16, #tpu.memory_space<vmem>>, %arg6: memref<1x128xf32, #tpu.memory_space<vmem>>, %arg7: memref<128x128xbf16, #tpu.memory_space<vmem>>, %arg8: memref<1x128xf32, #tpu.memory_space<vmem>>, %arg9: memref<128x128xbf16, #tpu.memory_space<vmem>>, %arg10: memref<1x128xf32, #tpu.memory_space<vmem>>, %arg11: memref<2x128x128xf32, #tpu.memory_space<vmem>>) attributes {dimension_semantics = [#tpu.dimension_semantics<parallel>], iteration_bounds = array<i64: 1>, scalar_prefetch = 0 : i64, scratch_operands = 0 : i64, tpu.core_type = #tpu.core_type<tc>, window_params = [{transform_indices = @transform_0, window_bounds = array<i64: 2, 128, 128>}, {pipeline_mode = #tpu.pipeline_mode<synchronous>, transform_indices = @transform_1, window_bounds = array<i64: 2, 128, 128>}, {pipeline_mode = #tpu.pipeline_mode<synchronous>, transform_indices = @transform_2, window_bounds = array<i64: 128, 128>}, {pipeline_mode = #tpu.pipeline_mode<synchronous>, transform_indices = @transform_3, window_bounds = array<i64: 1, 128>}, {pipeline_mode = #tpu.pipeline_mode<synchronous>, transform_indices = @transform_4, window_bounds = array<i64: 128, 128>}, {pipeline_mode = #tpu.pipeline_mode<synchronous>, transform_indices = @transform_5, window_bounds = array<i64: 1, 128>}, {pipeline_mode = #tpu.pipeline_mode<synchronous>, transform_indices = @transform_6, window_bounds = array<i64: 128, 128>}, {pipeline_mode = #tpu.pipeline_mode<synchronous>, transform_indices = @transform_7, window_bounds = array<i64: 1, 128>}, {pipeline_mode = #tpu.pipeline_mode<synchronous>, transform_indices = @transform_8, window_bounds = array<i64: 128, 128>}, {pipeline_mode = #tpu.pipeline_mode<synchronous>, transform_indices = @transform_9, window_bounds = array<i64: 1, 128>}, {transform_indices = @transform_10, window_bounds = array<i64: 2, 128, 128>}]} {
    %c0 = arith.constant 0 : index
    %c0_0 = arith.constant 0 : index
    %c0_1 = arith.constant 0 : index
    %0 = vector.load %arg1[%c0, %c0_0, %c0_1] : memref<2x128x128xbf16, #tpu.memory_space<vmem>>, vector<2x128x128xbf16>
    %c0_2 = arith.constant 0 : index
    %c0_3 = arith.constant 0 : index
    %c0_4 = arith.constant 0 : index
    %1 = vector.load %arg2[%c0_2, %c0_3, %c0_4] : memref<2x128x128xbf16, #tpu.memory_space<vmem>>, vector<2x128x128xbf16>
    %2 = vector.shape_cast %0 : vector<2x128x128xbf16> to vector<256x128xbf16>
    %c0_5 = arith.constant 0 : index
    %c0_6 = arith.constant 0 : index
    %3 = vector.load %arg3[%c0_5, %c0_6] : memref<128x128xbf16, #tpu.memory_space<vmem>>, vector<128x128xbf16>
    %cst = arith.constant dense<0.000000e+00> : vector<256x128xf32>
    %4 = tpu.matmul %2, %3, %cst {dimension_numbers = #tpu.dot_dimension_numbers<[1], [0], [0], [1], [0, 0, 1, 1], [], []>} : vector<256x128xbf16>, vector<128x128xbf16>, vector<256x128xf32> -> vector<256x128xf32>
    %c0_7 = arith.constant 0 : index
    %c0_8 = arith.constant 0 : index
    %5 = vector.load %arg4[%c0_7, %c0_8] : memref<1x128xf32, #tpu.memory_space<vmem>>, vector<1x128xf32>
    %6 = vector.broadcast %5 : vector<1x128xf32> to vector<256x128xf32>
    %7 = arith.addf %4, %6 : vector<256x128xf32>
    %8 = vector.shape_cast %1 : vector<2x128x128xbf16> to vector<256x128xbf16>
    %c0_9 = arith.constant 0 : index
    %c0_10 = arith.constant 0 : index
    %9 = vector.load %arg5[%c0_9, %c0_10] : memref<128x128xbf16, #tpu.memory_space<vmem>>, vector<128x128xbf16>
    %cst_11 = arith.constant dense<0.000000e+00> : vector<256x128xf32>
    %10 = tpu.matmul %8, %9, %cst_11 {dimension_numbers = #tpu.dot_dimension_numbers<[1], [0], [0], [1], [0, 0, 1, 1], [], []>} : vector<256x128xbf16>, vector<128x128xbf16>, vector<256x128xf32> -> vector<256x128xf32>
    %c0_12 = arith.constant 0 : index
    %c0_13 = arith.constant 0 : index
    %11 = vector.load %arg6[%c0_12, %c0_13] : memref<1x128xf32, #tpu.memory_space<vmem>>, vector<1x128xf32>
    %12 = vector.broadcast %11 : vector<1x128xf32> to vector<256x128xf32>
    %13 = arith.addf %10, %12 : vector<256x128xf32>
    %14 = vector.shape_cast %1 : vector<2x128x128xbf16> to vector<256x128xbf16>
    %c0_14 = arith.constant 0 : index
    %c0_15 = arith.constant 0 : index
    %15 = vector.load %arg7[%c0_14, %c0_15] : memref<128x128xbf16, #tpu.memory_space<vmem>>, vector<128x128xbf16>
    %cst_16 = arith.constant dense<0.000000e+00> : vector<256x128xf32>
    %16 = tpu.matmul %14, %15, %cst_16 {dimension_numbers = #tpu.dot_dimension_numbers<[1], [0], [0], [1], [0, 0, 1, 1], [], []>} : vector<256x128xbf16>, vector<128x128xbf16>, vector<256x128xf32> -> vector<256x128xf32>
    %c0_17 = arith.constant 0 : index
    %c0_18 = arith.constant 0 : index
    %17 = vector.load %arg8[%c0_17, %c0_18] : memref<1x128xf32, #tpu.memory_space<vmem>>, vector<1x128xf32>
    %18 = vector.broadcast %17 : vector<1x128xf32> to vector<256x128xf32>
    %19 = arith.addf %16, %18 : vector<256x128xf32>
    %20 = vector.shape_cast %7 : vector<256x128xf32> to vector<2x128x128xf32>
    %21 = vector.shape_cast %13 : vector<256x128xf32> to vector<2x128x128xf32>
    %22 = vector.shape_cast %19 : vector<256x128xf32> to vector<2x128x128xf32>
    %23 = tpu.iota {dimensions = array<i32: 1>} : vector<2x128x128xi32>
    %c8_i32 = arith.constant 8 : i32
    %24 = vector.broadcast %c8_i32 : i32 to vector<2x128x128xi32>
    %25 = arith.cmpi slt, %23, %24 : vector<2x128x128xi32>
    %cst_19 = arith.constant 0.000000e+00 : f32
    %26 = vector.broadcast %cst_19 : f32 to vector<2x128x128xf32>
    %27 = arith.select %25, %22, %26 : vector<2x128x128xi1>, vector<2x128x128xf32>
    %28 = arith.truncf %20 : vector<2x128x128xf32> to vector<2x128x128xbf16>
    %29 = arith.truncf %21 : vector<2x128x128xf32> to vector<2x128x128xbf16>
    %30 = arith.truncf %27 : vector<2x128x128xf32> to vector<2x128x128xbf16>
    "tpu.trace_start"() <{level = 10 : i32, message = "bnd,bmd->bnm"}> : () -> ()
    %cst_20 = arith.constant dense<0.000000e+00> : vector<2x128x128xf32>
    %31 = tpu.matmul %28, %29, %cst_20 {dimension_numbers = #tpu.dot_dimension_numbers<[2], [2], [1], [1], [0, 0, 0, 1, 1, 1], [0], [0]>} : vector<2x128x128xbf16>, vector<2x128x128xbf16>, vector<2x128x128xf32> -> vector<2x128x128xf32>
    "tpu.trace_stop"() : () -> ()
    %cst_21 = arith.constant dense<0xFF800000> : vector<128x128xf32>
    %32 = vector.multi_reduction <maximumf>, %31, %cst_21 [0] : vector<2x128x128xf32> to vector<128x128xf32>
    %33 = vector.shape_cast %32 : vector<128x128xf32> to vector<1x128x128xf32>
    %34 = vector.broadcast %33 : vector<1x128x128xf32> to vector<2x128x128xf32>
    %35 = arith.subf %31, %34 : vector<2x128x128xf32>
    %36 = math.exp %35 : vector<2x128x128xf32>
    %cst_22 = arith.constant dense<0.000000e+00> : vector<128x128xf32>
    %37 = vector.multi_reduction <add>, %36, %cst_22 [0] : vector<2x128x128xf32> to vector<128x128xf32>
    %38 = vector.shape_cast %37 : vector<128x128xf32> to vector<1x128x128xf32>
    %39 = tpu.reciprocal %38 {approx = true} : vector<1x128x128xf32> -> vector<1x128x128xf32>
    %40 = vector.broadcast %39 : vector<1x128x128xf32> to vector<2x128x128xf32>
    %41 = arith.mulf %36, %40 : vector<2x128x128xf32>
    %42 = arith.truncf %41 : vector<2x128x128xf32> to vector<2x128x128xbf16>
    "tpu.trace_start"() <{level = 10 : i32, message = "bnm,bmd->bnd"}> : () -> ()
    %cst_23 = arith.constant dense<0.000000e+00> : vector<2x128x128xf32>
    %43 = tpu.matmul %42, %30, %cst_23 {dimension_numbers = #tpu.dot_dimension_numbers<[2], [1], [1], [2], [0, 0, 0, 1, 1, 2], [0], [0]>} : vector<2x128x128xbf16>, vector<2x128x128xbf16>, vector<2x128x128xf32> -> vector<2x128x128xf32>
    "tpu.trace_stop"() : () -> ()
    %44 = vector.shape_cast %43 : vector<2x128x128xf32> to vector<256x128xf32>
    %45 = arith.truncf %44 : vector<256x128xf32> to vector<256x128xbf16>
    %c0_24 = arith.constant 0 : index
    %c0_25 = arith.constant 0 : index
    %46 = vector.load %arg9[%c0_24, %c0_25] : memref<128x128xbf16, #tpu.memory_space<vmem>>, vector<128x128xbf16>
    %cst_26 = arith.constant dense<0.000000e+00> : vector<256x128xf32>
    %47 = tpu.matmul %45, %46, %cst_26 {dimension_numbers = #tpu.dot_dimension_numbers<[1], [0], [0], [1], [0, 0, 1, 1], [], []>} : vector<256x128xbf16>, vector<128x128xbf16>, vector<256x128xf32> -> vector<256x128xf32>
    %c0_27 = arith.constant 0 : index
    %c0_28 = arith.constant 0 : index
    %48 = vector.load %arg10[%c0_27, %c0_28] : memref<1x128xf32, #tpu.memory_space<vmem>>, vector<1x128xf32>
    %49 = vector.broadcast %48 : vector<1x128xf32> to vector<256x128xf32>
    %50 = arith.addf %47, %49 : vector<256x128xf32>
    %51 = vector.shape_cast %50 : vector<256x128xf32> to vector<2x128x128xf32>
    %c0_29 = arith.constant 0 : index
    %c0_30 = arith.constant 0 : index
    %c0_31 = arith.constant 0 : index
    %52 = vector.load %arg11[%c0_29, %c0_30, %c0_31] : memref<2x128x128xf32, #tpu.memory_space<vmem>>, vector<2x128x128xf32>
    tpu.vector_store %arg11[%c0_29, %c0_30, %c0_31], %51 {strides = array<i32>} : memref<2x128x128xf32, #tpu.memory_space<vmem>>, vector<2x128x128xf32>,
    return
  }
  func.func @transform_0(%arg0: i32) -> (i32, i32, i32) {
    %c0_i32 = arith.constant 0 : i32
    %c0_i32_0 = arith.constant 0 : i32
    %c0_i32_1 = arith.constant 0 : i32
    return %c0_i32, %arg0, %c0_i32_0 : i32, i32, i32
  }
  func.func @transform_1(%arg0: i32) -> (i32, i32, i32) {
    %c0_i32 = arith.constant 0 : i32
    %c0_i32_0 = arith.constant 0 : i32
    %c0_i32_1 = arith.constant 0 : i32
    %c0_i32_2 = arith.constant 0 : i32
    return %c0_i32, %c0_i32_0, %c0_i32_1 : i32, i32, i32
  }
  func.func @transform_2(%arg0: i32) -> (i32, i32) {
    %c0_i32 = arith.constant 0 : i32
    %c0_i32_0 = arith.constant 0 : i32
    %c0_i32_1 = arith.constant 0 : i32
    return %c0_i32, %c0_i32_0 : i32, i32
  }
  func.func @transform_3(%arg0: i32) -> (i32, i32) {
    %c0_i32 = arith.constant 0 : i32
    %c0_i32_0 = arith.constant 0 : i32
    %c0_i32_1 = arith.constant 0 : i32
    return %c0_i32, %c0_i32_0 : i32, i32
  }
  func.func @transform_4(%arg0: i32) -> (i32, i32) {
    %c0_i32 = arith.constant 0 : i32
    %c0_i32_0 = arith.constant 0 : i32
    %c0_i32_1 = arith.constant 0 : i32
    return %c0_i32, %c0_i32_0 : i32, i32
  }
  func.func @transform_5(%arg0: i32) -> (i32, i32) {
    %c0_i32 = arith.constant 0 : i32
    %c0_i32_0 = arith.constant 0 : i32
    %c0_i32_1 = arith.constant 0 : i32
    return %c0_i32, %c0_i32_0 : i32, i32
  }
  func.func @transform_6(%arg0: i32) -> (i32, i32) {
    %c0_i32 = arith.constant 0 : i32
    %c0_i32_0 = arith.constant 0 : i32
    %c0_i32_1 = arith.constant 0 : i32
    return %c0_i32, %c0_i32_0 : i32, i32
  }
  func.func @transform_7(%arg0: i32) -> (i32, i32) {
    %c0_i32 = arith.constant 0 : i32
    %c0_i32_0 = arith.constant 0 : i32
    %c0_i32_1 = arith.constant 0 : i32
    return %c0_i32, %c0_i32_0 : i32, i32
  }
  func.func @transform_8(%arg0: i32) -> (i32, i32) {
    %c0_i32 = arith.constant 0 : i32
    %c0_i32_0 = arith.constant 0 : i32
    %c0_i32_1 = arith.constant 0 : i32
    return %c0_i32, %c0_i32_0 : i32, i32
  }
  func.func @transform_9(%arg0: i32) -> (i32, i32) {
    %c0_i32 = arith.constant 0 : i32
    %c0_i32_0 = arith.constant 0 : i32
    %c0_i32_1 = arith.constant 0 : i32
    return %c0_i32, %c0_i32_0 : i32, i32
  }
  func.func @transform_10(%arg0: i32) -> (i32, i32, i32) {
    %c0_i32 = arith.constant 0 : i32
    %c0_i32_0 = arith.constant 0 : i32
    %c0_i32_1 = arith.constant 0 : i32
    return %c0_i32, %arg0, %c0_i32_0 : i32, i32, i32
  }
}

</mosaic_0001>

<bundles_post_ra>
// kernel: tpu_custom_call.1
= control target key start
LH: loop header
LB: loop body
LE: loop exit
PB: predicated region body
PF: predicated region fallthrough
CT: control target
= control target key end

     0   :  { %15 = vsyncpa [#allocation3], 0  ;;  %s3525_s0 = inlined_call_operand.hbm [shape: bf16[2,128,128], index: 0, kind: input, shape index: {}]   ;;  %s3526_s1 = inlined_call_operand.hbm [shape: bf16[2,128,128], index: 1, kind: input, shape index: {}]   ;;  %s3527_s2 = inlined_call_operand.hbm [shape: bf16[128,128], index: 2, kind: input, shape index: {}]   ;;  %s3528_s3 = inlined_call_operand.vmem [shape: f32[1,128], index: 3, kind: input, shape index: {}]   ;;  %s3529_s4 = inlined_call_operand.hbm [shape: bf16[128,128], index: 4, kind: input, shape index: {}]   ;;  %s3530_s5 = inlined_call_operand.vmem [shape: f32[1,128], index: 5, kind: input, shape index: {}]   ;;  %s3531_s6 = inlined_call_operand.hbm [shape: bf16[128,128], index: 6, kind: input, shape index: {}]   ;;  %s3532_s7 = inlined_call_operand.vmem [shape: f32[1,128], index: 7, kind: input, shape index: {}]   ;;  %s3533_s8 = inlined_call_operand.hbm [shape: bf16[128,128], index: 8, kind: input, shape index: {}]   ;;  %s3534_s9 = inlined_call_operand.vmem [shape: f32[1,128], index: 9, kind: input, shape index: {}]   ;;  %s3535_s10 = inlined_call_operand.hbm [shape: f32[2,128,128], index: 10, kind: output, shape index: {}]  }
   0x1   :  { %16 = vsyncpa [#allocation6], 0 }
   0x2   :  { %17 = vsyncpa [#allocation9], 0 }
   0x3   :  { %18 = vsyncpa [#allocation12], 0 }
   0x4   :  { %19 = vsyncpa [#allocation4], 0  ;;  %s2922_s13 = smov [#allocation5]   ;;  %s2923_s15 = smov [#allocation8]  }
   0x5   :  { %s37_s14 = sshll.u32 %s2922_s13, 4  ;;  %s63_s16 = sshll.u32 %s2923_s15, 4  ;;  %s38_s14 = int_to_ptr.vmem [resolvable:$true] %s37_s14  ;;  %s2989_s16 = int_to_ptr.vmem [resolvable:$true] %s63_s16 }
   0x6   :  { %s2758_s19 = scalar_lea.hbm %s3526_s1, 2048 }
   0x7   :  { %p2759_p0 = scmp.ne.s32.totalorder %s3526_s1, %s2758_s19  ;;  %p2762_p1 = scmp.lt.u32.totalorder %s2758_s19, %s3526_s1 }
   0x9   :  { %p2764_p2 = pnand %p2762_p1, %p2759_p0 }
   0xb   :  { %2767 = shalt.err (!%p2764_p2)
}
   0xc   :  { %s2768_s24 = scalar_lea.vmem %s38_s14, 2048  ;;  %p2773_p4 = scmp.lt.s32.totalorder %s38_s14, %s38_s14 }
   0xd   :  { %p2769_p3 = scmp.ne.s32.totalorder %s38_s14, %s2768_s24  ;;  %p2774_p5 = scmp.lt.s32.totalorder %s2768_s24, %s2768_s24 }
   0xf   :  { %p2775_p6 = por %p2774_p5, %p2773_p4 }
  0x11   :  { %p2776_p7 = pnand %p2775_p6, %p2769_p3 }
  0x13   :  { %2779 = shalt.err (!%p2776_p7)
}
  0x14   :  { %s2924_s25 = smov 64   ;;  %s2925_s26 = smov 4  }
  0x15   :  { %43 = dma.hbm_to_vmem [thread:$0]  %s3526_s1, 2048, %s38_s14, [#allocation6], %s2924_s25, %s2924_s25, %s2925_s26  }
  0x16   :  { %s2780_s11 = scalar_lea.hbm %s3529_s4, 1024 }
  0x17   :  { %p2781_p8 = scmp.ne.s32.totalorder %s3529_s4, %s2780_s11  ;;  %p2784_p9 = scmp.lt.u32.totalorder %s2780_s11, %s3529_s4 }
  0x19   :  { %p2786_p10 = pnand %p2784_p9, %p2781_p8 }
  0x1b   :  { %2789 = shalt.err (!%p2786_p10)
}
  0x1c   :  { %s2790_s18 = scalar_lea.vmem %s2989_s16, 1024  ;;  %p2795_p12 = scmp.lt.s32.totalorder %s2989_s16, %s2989_s16 }
  0x1d   :  { %p2791_p11 = scmp.ne.s32.totalorder %s2989_s16, %s2790_s18  ;;  %p2796_p13 = scmp.lt.s32.totalorder %s2790_s18, %s2790_s18 }
  0x1f   :  { %p2797_p0 = por %p2796_p13, %p2795_p12 }
  0x21   :  { %p2798_p1 = pnand %p2797_p0, %p2791_p11 }
  0x23   :  { %2801 = shalt.err (!%p2798_p1)
}
  0x24   :  { %69 = dma.hbm_to_vmem [thread:$0]  %s3529_s4, 1024, %s2989_s16, [#allocation9], %s2924_s25, %s2924_s25, %s2925_s26  }
  0x25   :  { %s2926_s19 = smov [#allocation2]   ;;  %s2927_s21 = smov [#allocation7]  }
  0x26   :  { %s25_s20 = sshll.u32 %s2926_s19, 4  ;;  %s49_s22 = sshll.u32 %s2927_s21, 4  ;;  %s26_s20 = int_to_ptr.vmem [resolvable:$true] %s25_s20  ;;  %s3026_s22 = int_to_ptr.vmem [resolvable:$true] %s49_s22 }
  0x27   :  { %s2802_s27 = scalar_lea.hbm %s3525_s0, 2048 }
  0x28   :  { %p2803_p2 = scmp.ne.s32.totalorder %s3525_s0, %s2802_s27  ;;  %p2806_p3 = scmp.lt.u32.totalorder %s2802_s27, %s3525_s0 }
  0x2a   :  { %p2808_p4 = pnand %p2806_p3, %p2803_p2 }
  0x2c   :  { %2811 = shalt.err (!%p2808_p4)
}
  0x2d   :  { %s2812_s4 = scalar_lea.vmem %s26_s20, 2048  ;;  %p2817_p6 = scmp.lt.s32.totalorder %s26_s20, %s26_s20 }
  0x2e   :  { %p2813_p5 = scmp.ne.s32.totalorder %s26_s20, %s2812_s4  ;;  %p2818_p7 = scmp.lt.s32.totalorder %s2812_s4, %s2812_s4 }
  0x30   :  { %p2819_p8 = por %p2818_p7, %p2817_p6 }
  0x32   :  { %p2820_p9 = pnand %p2819_p8, %p2813_p5 }
  0x34   :  { %2823 = shalt.err (!%p2820_p9)
}
  0x35   :  { %31 = dma.hbm_to_vmem [thread:$0]  %s3525_s0, 2048, %s26_s20, [#allocation3], %s2924_s25, %s2924_s25, %s2925_s26  }
  0x36   :  { %s2824_s17 = scalar_lea.hbm %s3527_s2, 1024 }
  0x37   :  { %p2825_p10 = scmp.ne.s32.totalorder %s3527_s2, %s2824_s17  ;;  %p2828_p11 = scmp.lt.u32.totalorder %s2824_s17, %s3527_s2 }
  0x39   :  { %p2830_p12 = pnand %p2828_p11, %p2825_p10 }
  0x3b   :  { %2833 = shalt.err (!%p2830_p12)
}
  0x3c   :  { %s2834_s21 = scalar_lea.vmem %s3026_s22, 1024  ;;  %p2839_p0 = scmp.lt.s32.totalorder %s3026_s22, %s3026_s22 }
  0x3d   :  { %p2835_p13 = scmp.ne.s32.totalorder %s3026_s22, %s2834_s21  ;;  %p2840_p1 = scmp.lt.s32.totalorder %s2834_s21, %s2834_s21 }
  0x3f   :  { %p2841_p2 = por %p2840_p1, %p2839_p0 }
  0x41   :  { %p2842_p3 = pnand %p2841_p2, %p2835_p13 }
  0x43   :  { %2845 = shalt.err (!%p2842_p3)
}
  0x44   :  { %55 = dma.hbm_to_vmem [thread:$0]  %s3527_s2, 1024, %s3026_s22, [#allocation6], %s2924_s25, %s2924_s25, %s2925_s26  }
  0x45   :  { %s2928_s23 = smov [#allocation10]   ;;  %s2929_s27 = smov [#allocation11]  }
  0x46   :  { %s77_s24 = sshll.u32 %s2928_s23, 4  ;;  %s91_s28 = sshll.u32 %s2929_s27, 4  ;;  %s78_s24 = int_to_ptr.vmem [resolvable:$true] %s77_s24  ;;  %s3063_s28 = int_to_ptr.vmem [resolvable:$true] %s91_s28 }
  0x47   :  { %s2846_s11 = scalar_lea.hbm %s3531_s6, 1024 }
  0x48   :  { %p2847_p4 = scmp.ne.s32.totalorder %s3531_s6, %s2846_s11  ;;  %p2850_p5 = scmp.lt.u32.totalorder %s2846_s11, %s3531_s6 }
  0x4a   :  { %p2852_p6 = pnand %p2850_p5, %p2847_p4 }
  0x4c   :  { %2855 = shalt.err (!%p2852_p6)
}
  0x4d   :  { %s2856_s2 = scalar_lea.vmem %s78_s24, 1024  ;;  %p2861_p8 = scmp.lt.s32.totalorder %s78_s24, %s78_s24 }
  0x4e   :  { %p2857_p7 = scmp.ne.s32.totalorder %s78_s24, %s2856_s2  ;;  %p2862_p9 = scmp.lt.s32.totalorder %s2856_s2, %s2856_s2 }
  0x50   :  { %p2863_p10 = por %p2862_p9, %p2861_p8 }
  0x52   :  { %p2864_p11 = pnand %p2863_p10, %p2857_p7 }
  0x54   :  { %2867 = shalt.err (!%p2864_p11)
}
  0x55   :  { %83 = dma.hbm_to_vmem [thread:$0]  %s3531_s6, 1024, %s78_s24, [#allocation9], %s2924_s25, %s2924_s25, %s2925_s26  }
  0x56   :  { %s2868_s1 = scalar_lea.hbm %s3533_s8, 1024 }
  0x57   :  { %p2869_p12 = scmp.ne.s32.totalorder %s3533_s8, %s2868_s1  ;;  %p2872_p13 = scmp.lt.u32.totalorder %s2868_s1, %s3533_s8 }
  0x59   :  { %p2874_p0 = pnand %p2872_p13, %p2869_p12 }
  0x5b   :  { %2877 = shalt.err (!%p2874_p0)
}
  0x5c   :  { %s2878_s20 = scalar_lea.vmem %s3063_s28, 1024  ;;  %p2883_p2 = scmp.lt.s32.totalorder %s3063_s28, %s3063_s28 }
  0x5d   :  { %p2879_p1 = scmp.ne.s32.totalorder %s3063_s28, %s2878_s20  ;;  %p2884_p3 = scmp.lt.s32.totalorder %s2878_s20, %s2878_s20 }
  0x5f   :  { %p2885_p4 = por %p2884_p3, %p2883_p2 }
  0x61   :  { %p2886_p5 = pnand %p2885_p4, %p2879_p1 }
  0x63   :  { %2889 = shalt.err (!%p2886_p5)
}
  0x64   :  { %97 = dma.hbm_to_vmem [thread:$0]  %s3533_s8, 1024, %s3063_s28, [#allocation12], %s2924_s25, %s2924_s25, %s2925_s26  }
  0x65   :  { %2912 = dma.done.wait [#allocation3], 2048  }
  0x66   :  { %2913 = vsyncadd [#allocation3], 4294965248 }
  0x67   :  { %2914 = dma.done.wait [#allocation6], 3072  }
  0x68   :  { %2915 = vsyncadd [#allocation6], 4294964224 }
  0x69   :  { %2916 = dma.done.wait [#allocation9], 2048  }
  0x6a   :  { %2917 = vsyncadd [#allocation9], 4294965248 }
  0x6b   :  { %2918 = dma.done.wait [#allocation12], 1024  }
  0x6c   :  { %2919 = vsyncadd [#allocation12], 4294966272  ;;  %v2598_v0 = vld [vmem:[#allocation7] sm:$0xff]   ;;  %v2599_v1 = vld [vmem:[#allocation7 + $0x8] sm:$0xff]  }
  0x6d   :  { %2570 = vmatprep.subr.bf16.mxu1 %v2598_v0  ;;  %2278 = vmatprep.subr.bf16.mxu0 %v2598_v0  ;;  %v2600_v2 = vld [vmem:[#allocation7 + $0x10] sm:$0xff]   ;;  %v2601_v3 = vld [vmem:[#allocation7 + $0x18] sm:$0xff]   ;;  %v2606_v4 = vld [vmem:[#allocation2 + $0x40] sm:$0xff]  }
  0x6e   :  { %2578 = vmatpush3.bf16.msra.mxu1 %v2598_v0  ;;  %2279 = vmatpush3.bf16.msra.mxu0 %v2598_v0  ;;  %v2602_v5 = vld [vmem:[#allocation7 + $0x20] sm:$0xff]   ;;  %v2603_v6 = vld [vmem:[#allocation7 + $0x28] sm:$0xff]   ;;  %v2604_v7 = vld [vmem:[#allocation7 + $0x30] sm:$0xff]  }
  0x6f   :  { %2571 = vmatprep.subr.bf16.mxu1 %v2599_v1  ;;  %2280 = vmatprep.subr.bf16.mxu0 %v2599_v1  ;;  %v2605_v8 = vld [vmem:[#allocation7 + $0x38] sm:$0xff]   ;;  %v2608_v9 = vld [vmem:[#allocation8] sm:$0xff]   ;;  %v2607_v10 = vld [vmem:[#allocation2 + $0x48] sm:$0xff]  }
  0x70   :  { %2310 = vmatprep.mubr.bf16.mxu1 %v2606_v4  ;;  %v2610_v11 = vld [vmem:[#allocation2 + $0x50] sm:$0xff]   ;;  %v2609_v12 = vld [vmem:[#allocation8 + $0x8] sm:$0xff]   ;;  %v2611_v14 = vld [vmem:[#allocation2 + $0x58] sm:$0xff]  }
  0x71   :  { %v2612_v13 = vld [vmem:[#allocation8 + $0x10] sm:$0xff]   ;;  %v2613_v15 = vld [vmem:[#allocation8 + $0x18] sm:$0xff]   ;;  %v2614_v16 = vld [vmem:[#allocation2 + $0x60] sm:$0xff]  }
  0x72   :  { %2579 = vmatpush3.bf16.msra.mxu1 %v2599_v1  ;;  %2281 = vmatpush3.bf16.msra.mxu0 %v2599_v1  ;;  %v2638_v17 = vld [vmem:[#allocation2] sm:$0xff]   ;;  %v2639_v18 = vld [vmem:[#allocation2 + $0x8] sm:$0xff]   ;;  %v2640_v19 = vld [vmem:[#allocation2 + $0x10] sm:$0xff]  }
  0x73   :  { %2572 = vmatprep.subr.bf16.mxu1 %v2600_v2  ;;  %2282 = vmatprep.subr.bf16.mxu0 %v2600_v2  ;;  %v2616_v20 = vld [vmem:[#allocation8 + $0x20] sm:$0xff]   ;;  %v2615_v21 = vld [vmem:[#allocation2 + $0x68] sm:$0xff]   ;;  %v2618_v25 = vld [vmem:[#allocation2 + $0x70] sm:$0xff]  }
  0x74   :  { %2294 = vmatprep.mubr.bf16.mxu0 %v2638_v17  ;;  %v2642_v22 = vld [vmem:[#allocation10] sm:$0xff]   ;;  %v2643_v23 = vld [vmem:[#allocation10 + $0x8] sm:$0xff]   ;;  %v2641_v26 = vld [vmem:[#allocation2 + $0x18] sm:$0xff]  }
  0x75   :  { %v2617_v24 = vld [vmem:[#allocation8 + $0x28] sm:$0xff]   ;;  %v2644_v27 = vld [vmem:[#allocation2 + $0x20] sm:$0xff]   ;;  %v2646_v28 = vld [vmem:[#allocation10 + $0x10] sm:$0xff]  }
  0x76   :  { %2580 = vmatpush3.bf16.msra.mxu1 %v2600_v2  ;;  %2283 = vmatpush3.bf16.msra.mxu0 %v2600_v2  ;;  %v2619_v29 = vld [vmem:[#allocation2 + $0x78] sm:$0xff]   ;;  %v2620_v30 = vld [vmem:[#allocation8 + $0x30] sm:$0xff]   ;;  %v2622_v31 = vld [vmem:[#allocation5] sm:$0xff]  }
  0x77   :  { %2573 = vmatprep.subr.bf16.mxu1 %v2601_v3  ;;  %2284 = vmatprep.subr.bf16.mxu0 %v2601_v3  ;;  %v2621_v32 = vld [vmem:[#allocation8 + $0x38] sm:$0xff]   ;;  %v2645_v33 = vld [vmem:[#allocation2 + $0x28] sm:$0xff]   ;;  %v2648_v35 = vld [vmem:[#allocation2 + $0x30] sm:$0xff]  }
  0x78   :  { %v2647_v34 = vld [vmem:[#allocation10 + $0x18] sm:$0xff]   ;;  %v2650_v36 = vld [vmem:[#allocation10 + $0x20] sm:$0xff]   ;;  %v2623_v37 = vld [vmem:[#allocation5 + $0x8] sm:$0xff]  }
  0x79   :  { %v2651_v38 = vld [vmem:[#allocation10 + $0x28] sm:$0xff]   ;;  %v2624_v39 = vld [vmem:[#allocation5 + $0x10] sm:$0xff]   ;;  %v2649_v40 = vld [vmem:[#allocation2 + $0x38] sm:$0xff]  }
  0x7a   :  { %2581 = vmatpush3.bf16.msra.mxu1 %v2601_v3  ;;  %2285 = vmatpush3.bf16.msra.mxu0 %v2601_v3  ;;  %v2652_v41 = vld [vmem:[#allocation10 + $0x30] sm:$0xff]   ;;  %v2625_v42 = vld [vmem:[#allocation5 + $0x18] sm:$0xff]   ;;  %v2626_v44 = vld [vmem:[#allocation5 + $0x20] sm:$0xff]  }
  0x7b   :  { %2574 = vmatprep.subr.bf16.mxu1 %v2602_v5  ;;  %2286 = vmatprep.subr.bf16.mxu0 %v2602_v5  ;;  %v2653_v43 = vld [vmem:[#allocation10 + $0x38] sm:$0xff]   ;;  %v2627_v45 = vld [vmem:[#allocation5 + $0x28] sm:$0xff]   ;;  %v2628_v46 = vld [vmem:[#allocation5 + $0x30] sm:$0xff]  }
  0x7c   :  { %v2629_v47 = vld [vmem:[#allocation5 + $0x38] sm:$0xff]   ;;  %v2630_v48 = vld [vmem:[#allocation5 + $0x40] sm:$0xff]   ;;  %v2631_v49 = vld [vmem:[#allocation5 + $0x48] sm:$0xff]  }
  0x7d   :  { %v2632_v50 = vld [vmem:[#allocation5 + $0x50] sm:$0xff]   ;;  %v2633_v51 = vld [vmem:[#allocation5 + $0x58] sm:$0xff]   ;;  %v2634_v52 = vld [vmem:[#allocation5 + $0x60] sm:$0xff]  }
  0x7e   :  { %2582 = vmatpush3.bf16.msra.mxu1 %v2602_v5  ;;  %2287 = vmatpush3.bf16.msra.mxu0 %v2602_v5  ;;  %v2635_v53 = vld [vmem:[#allocation5 + $0x68] sm:$0xff]   ;;  %v2636_v54 = vld [vmem:[#allocation5 + $0x70] sm:$0xff]   ;;  %v2637_v55 = vld [vmem:[#allocation5 + $0x78] sm:$0xff]  }
  0x7f   :  { %2575 = vmatprep.subr.bf16.mxu1 %v2603_v6  ;;  %2288 = vmatprep.subr.bf16.mxu0 %v2603_v6  ;;  %v3103_v56 = vld [vmem:[%s3528_s3] ss:$0 sm:$0xff] }
  0x82   :  { %2583 = vmatpush3.bf16.msra.mxu1 %v2603_v6  ;;  %2289 = vmatpush3.bf16.msra.mxu0 %v2603_v6 }
  0x83   :  { %2576 = vmatprep.subr.bf16.mxu1 %v2604_v7  ;;  %2290 = vmatprep.subr.bf16.mxu0 %v2604_v7 }
  0x86   :  { %2584 = vmatpush3.bf16.msra.mxu1 %v2604_v7  ;;  %2291 = vmatpush3.bf16.msra.mxu0 %v2604_v7 }
  0x87   :  { %2577 = vmatprep.subr.bf16.mxu1 %v2605_v8  ;;  %2292 = vmatprep.subr.bf16.mxu0 %v2605_v8 }
  0x8a   :  { %2585 = vmatpush3.bf16.msra.mxu1 %v2605_v8  ;;  %2293 = vmatpush3.bf16.msra.mxu0 %v2605_v8 }
  0x8b   :  { %2326 = vmatprep.subr.bf16.mxu1 %v2608_v9  ;;  %2374 = vmatprep.subr.bf16.mxu0 %v2642_v22 }
  0x8d   :  { %2311 = vmatmul.mubr.bf16.vlgmr.msra.gmra.mrb[0].mxu1 %v2607_v10  ;;  %2295 = vmatmul.mubr.bf16.vlgmr.msra.gmra.mrb[0].mxu0 %v2639_v18 }
  0x8e   :  { %2327 = vmatpush3.bf16.msra.mxu1 %v2608_v9  ;;  %2314 = vmatprep.mubr.bf16.mxu1 %v2610_v11 }
  0x8f   :  { %2328 = vmatprep.subr.bf16.mxu1 %v2609_v12  ;;  %2298 = vmatprep.mubr.bf16.mxu0 %v2640_v19 }
  0x90   :  { %2375 = vmatpush3.bf16.msra.mxu0 %v2642_v22 }
  0x91   :  { %2376 = vmatprep.subr.bf16.mxu0 %v2643_v23 }
  0x92   :  { %2329 = vmatpush3.bf16.msra.mxu1 %v2609_v12 }
  0x93   :  { %2330 = vmatprep.subr.bf16.mxu1 %v2612_v13 }
  0x94   :  { %2377 = vmatpush3.bf16.msra.mxu0 %v2643_v23 }
  0x95   :  { %2315 = vmatmul.mubr.bf16.gmra.mrb[4].mxu1 %v2611_v14  ;;  %2299 = vmatmul.mubr.bf16.gmra.mrb[4].mxu0 %v2641_v26 }
  0x96   :  { %2331 = vmatpush3.bf16.msra.mxu1 %v2612_v13  ;;  %2318 = vmatprep.mubr.bf16.mxu1 %v2614_v16 }
  0x97   :  { %2332 = vmatprep.subr.bf16.mxu1 %v2613_v15  ;;  %2302 = vmatprep.mubr.bf16.mxu0 %v2644_v27 }
  0x98   :  { %2378 = vmatprep.subr.bf16.mxu0 %v2646_v28 }
  0x99   :  { %2379 = vmatpush3.bf16.msra.mxu0 %v2646_v28 }
  0x9a   :  { %2333 = vmatpush3.bf16.msra.mxu1 %v2613_v15  ;;  %2380 = vmatprep.subr.bf16.mxu0 %v2647_v34 }
  0x9b   :  { %2334 = vmatprep.subr.bf16.mxu1 %v2616_v20 }
  0x9d   :  { %2319 = vmatmul.mubr.bf16.gmra.mrb[8].mxu1 %v2615_v21  ;;  %2303 = vmatmul.mubr.bf16.gmra.mrb[8].mxu0 %v2645_v33 }
  0x9e   :  { %2335 = vmatpush3.bf16.msra.mxu1 %v2616_v20  ;;  %2322 = vmatprep.mubr.bf16.mxu1 %v2618_v25 }
  0x9f   :  { %2336 = vmatprep.subr.bf16.mxu1 %v2617_v24  ;;  %2381 = vmatpush3.bf16.msra.mxu0 %v2647_v34 }
  0xa0   :  { %2306 = vmatprep.mubr.bf16.mxu0 %v2648_v35  ;;  %2382 = vmatprep.subr.bf16.mxu0 %v2650_v36 }
  0xa2   :  { %2337 = vmatpush3.bf16.msra.mxu1 %v2617_v24 }
  0xa3   :  { %2338 = vmatprep.subr.bf16.mxu1 %v2620_v30  ;;  %2383 = vmatpush3.bf16.msra.mxu0 %v2650_v36 }
  0xa4   :  { %2384 = vmatprep.subr.bf16.mxu0 %v2651_v38 }
  0xa5   :  { %2323 = vmatmul.mubr.bf16.gmra.mrb[12].mxu1 %v2619_v29  ;;  %2307 = vmatmul.mubr.bf16.gmra.mrb[12].mxu0 %v2649_v40 }
  0xa6   :  { %2339 = vmatpush3.bf16.msra.mxu1 %v2620_v30  ;;  %2342 = vmatprep.mubr.bf16.mxu1 %v2622_v31 }
  0xa7   :  { %2340 = vmatprep.subr.bf16.mxu1 %v2621_v32  ;;  %2385 = vmatpush3.bf16.msra.mxu0 %v2651_v38 }
  0xa8   :  { %2390 = vmatprep.mubr.bf16.mxu0 %v2622_v31  ;;  %2386 = vmatprep.subr.bf16.mxu0 %v2652_v41 }
  0xaa   :  { %2341 = vmatpush3.bf16.msra.mxu1 %v2621_v32 }
  0xab   :  { %2387 = vmatpush3.bf16.msra.mxu0 %v2652_v41 }
  0xac   :  { %2388 = vmatprep.subr.bf16.mxu0 %v2653_v43 }
  0xad   :  { %2343 = vmatmul.mubr.bf16.vlgmr.msra.gmra.mrb[16].mxu1 %v2623_v37 }
  0xae   :  { %2346 = vmatprep.mubr.bf16.mxu1 %v2624_v39 }
  0xaf   :  { %2389 = vmatpush3.bf16.msra.mxu0 %v2653_v43 }
  0xb2   :  { %2391 = vmatmul.mubr.bf16.vlgmr.msra.gmra.mrb[16].mxu0 %v2623_v37 }
  0xb3   :  { %2394 = vmatprep.mubr.bf16.mxu0 %v2624_v39 }
  0xb5   :  { %2347 = vmatmul.mubr.bf16.gmra.mrb[20].mxu1 %v2625_v42 }
  0xb6   :  { %2350 = vmatprep.mubr.bf16.mxu1 %v2626_v44 }
  0xba   :  { %2395 = vmatmul.mubr.bf16.gmra.mrb[20].mxu0 %v2625_v42 }
  0xbb   :  { %2398 = vmatprep.mubr.bf16.mxu0 %v2626_v44 }
  0xbd   :  { %2351 = vmatmul.mubr.bf16.gmra.mrb[24].mxu1 %v2627_v45 }
  0xbe   :  { %2354 = vmatprep.mubr.bf16.mxu1 %v2628_v46 }
  0xc2   :  { %2399 = vmatmul.mubr.bf16.gmra.mrb[24].mxu0 %v2627_v45 }
  0xc3   :  { %2402 = vmatprep.mubr.bf16.mxu0 %v2628_v46 }
  0xc5   :  { %2355 = vmatmul.mubr.bf16.gmra.mrb[28].mxu1 %v2629_v47 }
  0xc6   :  { %2358 = vmatprep.mubr.bf16.mxu1 %v2630_v48 }
  0xca   :  { %2403 = vmatmul.mubr.bf16.gmra.mrb[28].mxu0 %v2629_v47 }
  0xcb   :  { %2406 = vmatprep.mubr.bf16.mxu0 %v2630_v48 }
  0xcd   :  { %2359 = vmatmul.mubr.bf16.gmra.mrb[32].mxu1 %v2631_v49 }
  0xce   :  { %2362 = vmatprep.mubr.bf16.mxu1 %v2632_v50 }
  0xd2   :  { %2407 = vmatmul.mubr.bf16.gmra.mrb[32].mxu0 %v2631_v49 }
  0xd3   :  { %2410 = vmatprep.mubr.bf16.mxu0 %v2632_v50 }
  0xd5   :  { %2363 = vmatmul.mubr.bf16.gmra.mrb[36].mxu1 %v2633_v51 }
  0xd6   :  { %2366 = vmatprep.mubr.bf16.mxu1 %v2634_v52 }
  0xda   :  { %2411 = vmatmul.mubr.bf16.gmra.mrb[36].mxu0 %v2633_v51 }
  0xdb   :  { %2414 = vmatprep.mubr.bf16.mxu0 %v2634_v52 }
  0xdd   :  { %2367 = vmatmul.mubr.bf16.gmra.mrb[40].mxu1 %v2635_v53 }
  0xde   :  { %2370 = vmatprep.mubr.bf16.mxu1 %v2636_v54 }
  0xe2   :  { %2415 = vmatmul.mubr.bf16.gmra.mrb[40].mxu0 %v2635_v53 }
  0xe3   :  { %2418 = vmatprep.mubr.bf16.mxu0 %v2636_v54 }
  0xe5   :  { %2371 = vmatmul.mubr.bf16.gmra.mrb[44].mxu1 %v2637_v55 }
  0xea   :  { %2419 = vmatmul.mubr.bf16.gmra.mrb[44].mxu0 %v2637_v55 }
 0x160   :  { %v2312_v57 = vpop.f32.mrb[0].mxu1  ;;  %v2296_v8 = vpop.f32.mrb[0].mxu0 }
 0x161   :  { %v3106_v58 = vadd.f32 %v2312_v57, %v3103_v56  ;;  %v448_v59 = vpop.f32.mrb[1].mxu1  ;;  %v3125_v11 = vadd.f32 %v2296_v8, %v3103_v56  ;;  %v384_v12 = vpop.f32.mrb[1].mxu0 }
 0x162   :  { %v2313_v60 = vpop.f32.mrb[2].mxu1  ;;  %v449_v63 = vadd.f32 %v3103_v56, %v448_v59  ;;  %v385_v14 = vadd.f32 %v3103_v56, %v384_v12  ;;  %v2297_v15 = vpop.f32.mrb[2].mxu0 }
 0x163   :  { %v3109_v61 = vadd.f32 %v2313_v60, %v3103_v56  ;;  %v451_v62 = vpop.f32.mrb[3].mxu1  ;;  %v3134_v17 = vadd.f32 %v2297_v15, %v3103_v56  ;;  %v387_v18 = vpop.f32.mrb[3].mxu0 }
 0x164   :  { %v452_v0 = vadd.f32 %v3103_v56, %v451_v62  ;;  %v388_v20 = vadd.f32 %v3103_v56, %v387_v18 }
 0x165   :  { %v1145_v1 = vpack.c.bf16 %v3109_v61, %v3106_v58  ;;  %v1137_v21 = vpack.c.bf16 %v3134_v17, %v3125_v11 }
 0x166   :  { %v1144_v2 = vpack.c.bf16 %v452_v0, %v449_v63  ;;  %v1136_v23 = vpack.c.bf16 %v388_v20, %v385_v14 }
 0x168   :  { %v2316_v3 = vpop.f32.mrb[4].mxu1  ;;  %2470 = vmatprep.mubr.bf16.mxu0 %v1144_v2  ;;  %v2300_v28 = vpop.f32.mrb[4].mxu0  ;;  %2438 = vmatprep.mubr.bf16.mxu1 %v1136_v23 }
 0x169   :  { %v3116_v4 = vadd.f32 %v2316_v3, %v3103_v56  ;;  %v464_v5 = vpop.f32.mrb[5].mxu1  ;;  %v3151_v31 = vadd.f32 %v2300_v28, %v3103_v56  ;;  %v400_v32 = vpop.f32.mrb[5].mxu0  ;;  %v3206_v3 = vld [vmem:[%s3530_s5] ss:$0 sm:$0xff] }
 0x16a   :  { %v3119_v6 = vadd.f32 %v3103_v56, %v464_v5  ;;  %v2317_v7 = vpop.f32.mrb[6].mxu1  ;;  %v3157_v34 = vadd.f32 %v3103_v56, %v400_v32  ;;  %v2301_v35 = vpop.f32.mrb[6].mxu0 }
 0x16b   :  { %v3122_v9 = vadd.f32 %v2317_v7, %v3103_v56  ;;  %v467_v10 = vpop.f32.mrb[7].mxu1  ;;  %v3162_v37 = vadd.f32 %v2301_v35, %v3103_v56  ;;  %v403_v38 = vpop.f32.mrb[7].mxu0 }
 0x16c   :  { %v3128_v13 = vadd.f32 %v3103_v56, %v467_v10  ;;  %v3167_v40 = vadd.f32 %v3103_v56, %v403_v38 }
 0x16d   :  { %v1147_v16 = vpack.c.bf16 %v3122_v9, %v3116_v4  ;;  %v1139_v41 = vpack.c.bf16 %v3162_v37, %v3151_v31  ;;  %v2657_v37 = vld [vmem:[#allocation11 + $0x18] sm:$0xff]  }
 0x16e   :  { %v1146_v19 = vpack.c.bf16 %v3128_v13, %v3119_v6  ;;  %v1138_v43 = vpack.c.bf16 %v3167_v40, %v3157_v34 }
 0x170   :  { %v2320_v22 = vpop.f32.mrb[8].mxu1  ;;  %v2304_v48 = vpop.f32.mrb[8].mxu0 }
 0x171   :  { %v3142_v24 = vadd.f32 %v2320_v22, %v3103_v56  ;;  %v480_v25 = vpop.f32.mrb[9].mxu1  ;;  %v3183_v51 = vadd.f32 %v2304_v48, %v3103_v56  ;;  %v416_v52 = vpop.f32.mrb[9].mxu0 }
 0x172   :  { %v3145_v26 = vadd.f32 %v3103_v56, %v480_v25  ;;  %v2321_v27 = vpop.f32.mrb[10].mxu1  ;;  %v3189_v54 = vadd.f32 %v3103_v56, %v416_v52  ;;  %v2305_v55 = vpop.f32.mrb[10].mxu0 }
 0x173   :  { %v3148_v29 = vadd.f32 %v2321_v27, %v3103_v56  ;;  %v483_v30 = vpop.f32.mrb[11].mxu1  ;;  %v3194_v59 = vadd.f32 %v2305_v55, %v3103_v56  ;;  %v419_v60 = vpop.f32.mrb[11].mxu0 }
 0x174   :  { %v3154_v33 = vadd.f32 %v3103_v56, %v483_v30  ;;  %v3199_v63 = vadd.f32 %v3103_v56, %v419_v60 }
 0x175   :  { %v1141_v0 = vpack.c.bf16 %v3194_v59, %v3183_v51  ;;  %v3536_v11 = vpack.c.bf16 %v3148_v29, %v3142_v24  ;;  %v2655_v24 = vld [vmem:[#allocation11 + $0x8] sm:$0xff]  }
 0x176   :  { %v1148_v39 = vpack.c.bf16 %v3154_v33, %v3145_v26  ;;  %v1140_v5 = vpack.c.bf16 %v3199_v63, %v3189_v54  ;;  %v2656_v33 = vld [vmem:[#allocation11 + $0x10] sm:$0xff]  }
 0x178   :  { %v2324_v42 = vpop.f32.mrb[12].mxu1  ;;  %v2308_v10 = vpop.f32.mrb[12].mxu0 }
 0x179   :  { %v3174_v44 = vadd.f32 %v2324_v42, %v3103_v56  ;;  %v496_v45 = vpop.f32.mrb[13].mxu1  ;;  %v3213_v18 = vadd.f32 %v2308_v10, %v3103_v56  ;;  %v432_v20 = vpop.f32.mrb[13].mxu0 }
 0x17a   :  { %v3177_v46 = vadd.f32 %v3103_v56, %v496_v45  ;;  %v2325_v47 = vpop.f32.mrb[14].mxu1  ;;  %v3218_v25 = vadd.f32 %v3103_v56, %v432_v20  ;;  %v2309_v27 = vpop.f32.mrb[14].mxu0 }
 0x17b   :  { %v3180_v49 = vadd.f32 %v2325_v47, %v3103_v56  ;;  %v499_v50 = vpop.f32.mrb[15].mxu1  ;;  %v3221_v30 = vadd.f32 %v2309_v27, %v3103_v56  ;;  %v435_v32 = vpop.f32.mrb[15].mxu0 }
 0x17c   :  { %v3186_v53 = vadd.f32 %v3103_v56, %v499_v50  ;;  %v3224_v38 = vadd.f32 %v3103_v56, %v435_v32 }
 0x17d   :  { %v1143_v42 = vpack.c.bf16 %v3221_v30, %v3213_v18  ;;  %v3538_v61 = vpack.c.bf16 %v3180_v49, %v3174_v44 }
 0x17e   :  { %v1142_v47 = vpack.c.bf16 %v3224_v38, %v3218_v25  ;;  %v3537_v58 = vpack.c.bf16 %v3186_v53, %v3177_v46  ;;  %v2659_v46 = vld [vmem:[#allocation11 + $0x28] sm:$0xff]  }
 0x180   :  { %v2344_v2 = vpop.f32.mrb[16].mxu1 }
 0x181   :  { %v712_v7 = vpop.f32.mrb[17].mxu1  ;;  %v721_v12 = vadd.f32 %v2344_v2, %v3206_v3 }
 0x182   :  { %v2345_v8 = vpop.f32.mrb[18].mxu1  ;;  %v713_v22 = vadd.f32 %v3206_v3, %v712_v7 }
 0x183   :  { %v724_v14 = vadd.f32 %v2345_v8, %v3206_v3  ;;  %v715_v15 = vpop.f32.mrb[19].mxu1 }
 0x184   :  { %v716_v23 = vadd.f32 %v3206_v3, %v715_v15 }
 0x185   :  { %v1153_v28 = vpack.c.bf16 %v724_v14, %v721_v12  ;;  %v2392_v10 = vpop.f32.mrb[16].mxu0 }
 0x186   :  { %v1152_v35 = vpack.c.bf16 %v716_v23, %v713_v22  ;;  %v3234_v12 = vpop.f32.mrb[17].mxu0 }
 0x187   :  { %v2393_v15 = vpop.f32.mrb[18].mxu0 }
 0x188   :  { %v2348_v45 = vpop.f32.mrb[20].mxu1  ;;  %2422 = vmatprep.subr.bf16.mxu1 %v1152_v35  ;;  %v947_v22 = vpop.f32.mrb[19].mxu0 }
 0x189   :  { %v728_v48 = vpop.f32.mrb[21].mxu1  ;;  %2423 = vmatpush3.bf16.xpose.msra.mxu1 %v1152_v35  ;;  %v737_v52 = vadd.f32 %v2348_v45, %v3206_v3 }
 0x18a   :  { %v2349_v50 = vpop.f32.mrb[22].mxu1  ;;  %2424 = vmatprep.subr.bf16.mxu1 %v1153_v28  ;;  %v729_v56 = vadd.f32 %v3206_v3, %v728_v48 }
 0x18b   :  { %v740_v55 = vadd.f32 %v2349_v50, %v3206_v3  ;;  %v731_v60 = vpop.f32.mrb[23].mxu1 }
 0x18c   :  { %v732_v2 = vadd.f32 %v3206_v3, %v731_v60 }
 0x18d   :  { %v1155_v7 = vpack.c.bf16 %v740_v55, %v737_v52  ;;  %v2396_v55 = vpop.f32.mrb[20].mxu0 }
 0x18e   :  { %v1154_v8 = vpack.c.bf16 %v732_v2, %v729_v56  ;;  %v960_v60 = vpop.f32.mrb[21].mxu0 }
 0x18f   :  { %v2397_v2 = vpop.f32.mrb[22].mxu0 }
 0x190   :  { %v2352_v14 = vpop.f32.mrb[24].mxu1 }
 0x191   :  { %v744_v20 = vpop.f32.mrb[25].mxu1  ;;  %2425 = vmatpush3.bf16.xpose.msra.mxu1 %v1153_v28  ;;  %v753_v27 = vadd.f32 %v2352_v14, %v3206_v3  ;;  %v963_v28 = vpop.f32.mrb[23].mxu0 }
 0x192   :  { %v2353_v23 = vpop.f32.mrb[26].mxu1  ;;  %2426 = vmatprep.subr.bf16.mxu1 %v1154_v8  ;;  %v745_v45 = vadd.f32 %v3206_v3, %v744_v20 }
 0x193   :  { %v756_v32 = vadd.f32 %v2353_v23, %v3206_v3  ;;  %v747_v35 = vpop.f32.mrb[27].mxu1 }
 0x194   :  { %v748_v48 = vadd.f32 %v3206_v3, %v747_v35 }
 0x195   :  { %v1157_v50 = vpack.c.bf16 %v756_v32, %v753_v27 }
 0x196   :  { %v1156_v52 = vpack.c.bf16 %v748_v48, %v745_v45  ;;  %v2400_v45 = vpop.f32.mrb[24].mxu0 }
 0x197   :  { %v976_v48 = vpop.f32.mrb[25].mxu0 }
 0x198   :  { %v2356_v56 = vpop.f32.mrb[28].mxu1  ;;  %v2401_v60 = vpop.f32.mrb[26].mxu0 }
 0x199   :  { %v760_v10 = vpop.f32.mrb[29].mxu1  ;;  %2427 = vmatpush3.bf16.xpose.msra.mxu1 %v1154_v8  ;;  %v769_v14 = vadd.f32 %v2356_v56, %v3206_v3  ;;  %v979_v2 = vpop.f32.mrb[27].mxu0 }
 0x19a   :  { %v2357_v15 = vpop.f32.mrb[30].mxu1  ;;  %2428 = vmatprep.subr.bf16.mxu1 %v1155_v7  ;;  %v761_v20 = vadd.f32 %v3206_v3, %v760_v10 }
 0x19b   :  { %v772_v22 = vadd.f32 %v2357_v15, %v3206_v3  ;;  %v763_v23 = vpop.f32.mrb[31].mxu1 }
 0x19c   :  { %v764_v35 = vadd.f32 %v3206_v3, %v763_v23 }
 0x19d   :  { %v3244_v27 = vpack.c.bf16 %v772_v22, %v769_v14 }
 0x19e   :  { %v1158_v32 = vpack.c.bf16 %v764_v35, %v761_v20  ;;  %v2404_v20 = vpop.f32.mrb[28].mxu0 }
 0x19f   :  { %v992_v35 = vpop.f32.mrb[29].mxu0 }
 0x1a0   :  { %v2360_v55 = vpop.f32.mrb[32].mxu1  ;;  %v2405_v48 = vpop.f32.mrb[30].mxu0 }
 0x1a1   :  { %v776_v8 = vpop.f32.mrb[33].mxu1  ;;  %2429 = vmatpush3.bf16.xpose.msra.mxu1 %v1155_v7  ;;  %v785_v56 = vadd.f32 %v2360_v55, %v3206_v3  ;;  %v995_v55 = vpop.f32.mrb[31].mxu0 }
 0x1a2   :  { %v2361_v28 = vpop.f32.mrb[34].mxu1  ;;  %2430 = vmatprep.subr.bf16.mxu1 %v1156_v52  ;;  %v777_v10 = vadd.f32 %v3206_v3, %v776_v8 }
 0x1a3   :  { %v788_v15 = vadd.f32 %v2361_v28, %v3206_v3  ;;  %v779_v57 = vpop.f32.mrb[35].mxu1 }
 0x1a4   :  { %v780_v14 = vadd.f32 %v3206_v3, %v779_v57 }
 0x1a5   :  { %v1161_v22 = vpack.c.bf16 %v788_v15, %v785_v56 }
 0x1a6   :  { %v1160_v23 = vpack.c.bf16 %v780_v14, %v777_v10  ;;  %v2408_v14 = vpop.f32.mrb[32].mxu0 }
 0x1a7   :  { %v1008_v20 = vpop.f32.mrb[33].mxu0 }
 0x1a8   :  { %2454 = vmatprep.subr.bf16.mxu0 %v1160_v23  ;;  %v2364_v45 = vpop.f32.mrb[36].mxu1 }
 0x1a9   :  { %2431 = vmatpush3.bf16.xpose.msra.mxu1 %v1156_v52  ;;  %2455 = vmatpush3.bf16.xpose.msra.mxu0 %v1160_v23  ;;  %v801_v7 = vadd.f32 %v2364_v45, %v3206_v3  ;;  %v792_v60 = vpop.f32.mrb[37].mxu1  ;;  %v2409_v23 = vpop.f32.mrb[34].mxu0 }
 0x1aa   :  { %2432 = vmatprep.subr.bf16.mxu1 %v1157_v50  ;;  %2456 = vmatprep.subr.bf16.mxu0 %v1161_v22  ;;  %v793_v2 = vadd.f32 %v3206_v3, %v792_v60  ;;  %v2365_v8 = vpop.f32.mrb[38].mxu1  ;;  %v1011_v48 = vpop.f32.mrb[35].mxu0 }
 0x1ab   :  { %v804_v57 = vadd.f32 %v2365_v8, %v3206_v3  ;;  %v795_v28 = vpop.f32.mrb[39].mxu1 }
 0x1ac   :  { %v796_v56 = vadd.f32 %v3206_v3, %v795_v28 }
 0x1ad   :  { %v1163_v15 = vpack.c.bf16 %v804_v57, %v801_v7 }
 0x1ae   :  { %v1162_v10 = vpack.c.bf16 %v796_v56, %v793_v2  ;;  %v2412_v56 = vpop.f32.mrb[36].mxu0 }
 0x1b0   :  { %v2368_v52 = vpop.f32.mrb[40].mxu1 }
 0x1b1   :  { %2433 = vmatpush3.bf16.xpose.msra.mxu1 %v1157_v50  ;;  %2457 = vmatpush3.bf16.xpose.msra.mxu0 %v1161_v22  ;;  %v817_v35 = vadd.f32 %v2368_v52, %v3206_v3  ;;  %v808_v45 = vpop.f32.mrb[41].mxu1  ;;  %v2114_v50 = vld [vmem:[%s3532_s7] ss:$0 sm:$0xff]  ;;  %v1024_v22 = vpop.f32.mrb[37].mxu0 }
 0x1b2   :  { %2434 = vmatprep.subr.bf16.mxu1 %v1158_v32  ;;  %2458 = vmatprep.subr.bf16.mxu0 %v1162_v10  ;;  %v809_v60 = vadd.f32 %v3206_v3, %v808_v45  ;;  %v2369_v55 = vpop.f32.mrb[42].mxu1  ;;  %v2413_v52 = vpop.f32.mrb[38].mxu0 }
 0x1b3   :  { %v820_v8 = vadd.f32 %v2369_v55, %v3206_v3  ;;  %v811_v28 = vpop.f32.mrb[43].mxu1  ;;  %v1027_v48 = vpop.f32.mrb[39].mxu0  ;;  %v945_v55 = vadd.f32 %v2114_v50, %v3234_v12 }
 0x1b4   :  { %v812_v7 = vadd.f32 %v3206_v3, %v811_v28 }
 0x1b5   :  { %v1165_v2 = vpack.c.bf16 %v820_v8, %v817_v35 }
 0x1b6   :  { %v1164_v57 = vpack.c.bf16 %v812_v7, %v809_v60 }
 0x1b8   :  { %v2372_v14 = vpop.f32.mrb[44].mxu1 }
 0x1b9   :  { %2435 = vmatpush3.bf16.xpose.msra.mxu1 %v1158_v32  ;;  %2459 = vmatpush3.bf16.xpose.msra.mxu0 %v1162_v10  ;;  %v833_v23 = vadd.f32 %v2372_v14, %v3206_v3  ;;  %v824_v45 = vpop.f32.mrb[45].mxu1  ;;  %v2930_v10 = vmov 0.0   ;;  %v2416_v14 = vpop.f32.mrb[40].mxu0 }
 0x1ba   :  { %2436 = vmatprep.subr.bf16.mxu1 %v3244_v27  ;;  %2460 = vmatprep.subr.bf16.mxu0 %v1163_v15  ;;  %v825_v35 = vadd.f32 %v3206_v3, %v824_v45  ;;  %v2373_v60 = vpop.f32.mrb[46].mxu1  ;;  %v1168_v22 = vpack.c.bf16 %v2930_v10, %v945_v55  ;;  %v1040_v52 = vpop.f32.mrb[41].mxu0  ;;  %v1009_v45 = vadd.f32 %v2114_v50, %v1008_v20 }
 0x1bb   :  { %v836_v8 = vadd.f32 %v2373_v60, %v3206_v3  ;;  %v827_v28 = vpop.f32.mrb[47].mxu1  ;;  %v2417_v48 = vpop.f32.mrb[42].mxu0 }
 0x1bc   :  { %v828_v7 = vadd.f32 %v3206_v3, %v827_v28  ;;  %v1043_v62 = vpop.f32.mrb[43].mxu0  ;;  %v3268_v36 = vpack.c.bf16 %v2930_v10, %v1009_v45 }
 0x1bd   :  { %v1167_v56 = vpack.c.bf16 %v836_v8, %v833_v23  ;;  %v2420_v12 = vpop.f32.mrb[44].mxu0  ;;  %v2660_v62 = vld [vmem:[#allocation11 + $0x30] sm:$0xff]  }
 0x1be   :  { %v1166_v32 = vpack.c.bf16 %v828_v7, %v825_v35  ;;  %v1056_v60 = vpop.f32.mrb[45].mxu0 }
 0x1bf   :  { %v2421_v3 = vpop.f32.mrb[46].mxu0 }
 0x1c1   :  { %2437 = vmatpush3.bf16.xpose.msra.mxu1 %v3244_v27  ;;  %2461 = vmatpush3.bf16.xpose.msra.mxu0 %v1163_v15  ;;  %v1059_v27 = vpop.f32.mrb[47].mxu0 }
 0x1c2   :  { %2462 = vmatprep.subr.bf16.mxu0 %v1164_v57  ;;  %2486 = vmatprep.subr.bf16.mxu1 %v1168_v22 }
 0x1c8   :  { %2439 = vmatmul.mubr.bf16.vlgmr.msra.gmra.mrb[48].mxu1 %v1137_v21  ;;  %v2654_v21 = vld [vmem:[#allocation11] sm:$0xff]  }
 0x1c9   :  { %2463 = vmatpush3.bf16.xpose.msra.mxu0 %v1164_v57  ;;  %2442 = vmatprep.mubr.bf16.mxu1 %v1138_v43  ;;  %v2658_v43 = vld [vmem:[#allocation11 + $0x20] sm:$0xff]  }
 0x1ca   :  { %2464 = vmatprep.subr.bf16.mxu0 %v1165_v2  ;;  %2487 = vmatpush3.bf16.msra.mxu1 %v1168_v22 }
 0x1cb   :  { %2504 = vmatprep.subr.bf16.mxu1 %v3268_v36 }
 0x1d0   :  { %2443 = vmatmul.mubr.bf16.gmra.mrb[52].mxu1 %v1139_v41 }
 0x1d1   :  { %2465 = vmatpush3.bf16.xpose.msra.mxu0 %v1165_v2  ;;  %2446 = vmatprep.mubr.bf16.mxu1 %v1140_v5 }
 0x1d2   :  { %2466 = vmatprep.subr.bf16.mxu0 %v1166_v32 }
 0x1d8   :  { %2447 = vmatmul.mubr.bf16.gmra.mrb[56].mxu1 %v1141_v0 }
 0x1d9   :  { %2467 = vmatpush3.bf16.xpose.msra.mxu0 %v1166_v32  ;;  %2450 = vmatprep.mubr.bf16.mxu1 %v1142_v47 }
 0x1da   :  { %2468 = vmatprep.subr.bf16.mxu0 %v1167_v56 }
 0x1e0   :  { %2451 = vmatmul.mubr.bf16.gmra.mrb[60].mxu1 %v1143_v42 }
 0x1e1   :  { %2469 = vmatpush3.bf16.xpose.msra.mxu0 %v1167_v56 }
 0x1e2   :  { %2522 = vmatprep.subr.bf16.mxu0 %v2654_v21 }
 0x1e8   :  { %2471 = vmatmul.mubr.bf16.vlgmr.msra.gmra.mrb[48].mxu0 %v1145_v1 }
 0x1e9   :  { %2474 = vmatprep.mubr.bf16.mxu0 %v1146_v19  ;;  %2523 = vmatpush3.bf16.msra.mxu0 %v2654_v21 }
 0x1ea   :  { %2524 = vmatprep.subr.bf16.mxu0 %v2655_v24 }
 0x1ed   :  { %2525 = vmatpush3.bf16.msra.mxu0 %v2655_v24 }
 0x1ee   :  { %2526 = vmatprep.subr.bf16.mxu0 %v2656_v33 }
 0x1f0   :  { %2475 = vmatmul.mubr.bf16.gmra.mrb[52].mxu0 %v1147_v16 }
 0x1f1   :  { %2478 = vmatprep.mubr.bf16.mxu0 %v1148_v39  ;;  %2527 = vmatpush3.bf16.msra.mxu0 %v2656_v33 }
 0x1f2   :  { %2528 = vmatprep.subr.bf16.mxu0 %v2657_v37 }
 0x1f5   :  { %2529 = vmatpush3.bf16.msra.mxu0 %v2657_v37 }
 0x1f6   :  { %2530 = vmatprep.subr.bf16.mxu0 %v2658_v43 }
 0x1f8   :  { %2479 = vmatmul.mubr.bf16.gmra.mrb[56].mxu0 %v3536_v11 }
 0x1f9   :  { %2482 = vmatprep.mubr.bf16.mxu0 %v3537_v58  ;;  %2531 = vmatpush3.bf16.msra.mxu0 %v2658_v43 }
 0x1fa   :  { %2532 = vmatprep.subr.bf16.mxu0 %v2659_v46 }
 0x1fd   :  { %2533 = vmatpush3.bf16.msra.mxu0 %v2659_v46 }
 0x1fe   :  { %2534 = vmatprep.subr.bf16.mxu0 %v2660_v62 }
 0x200   :  { %2483 = vmatmul.mubr.bf16.gmra.mrb[60].mxu0 %v3538_v61 }
 0x201   :  { %2535 = vmatpush3.bf16.msra.mxu0 %v2660_v62 }
 0x29b   :  { %v2440_v1 = vpop.f32.mrb[48].mxu1 }
 0x29c   :  { %v1218_v6 = vpop.f32.mrb[49].mxu1 }
 0x29d   :  { %v2441_v4 = vpop.f32.mrb[50].mxu1 }
 0x29e   :  { %v1221_v9 = vpop.f32.mrb[51].mxu1 }
 0x2a3   :  { %v3313_v13 = vpop.f32.mrb[52].mxu1 }
 0x2a4   :  { %v3315_v16 = vpop.f32.mrb[53].mxu1 }
 0x2a5   :  { %v3317_v17 = vpop.f32.mrb[54].mxu1 }
 0x2a6   :  { %v3319_v19 = vpop.f32.mrb[55].mxu1 }
 0x2ab   :  { %v3321_v26 = vpop.f32.mrb[56].mxu1 }
 0x2ac   :  { %v3323_v29 = vpop.f32.mrb[57].mxu1 }
 0x2ad   :  { %v3325_v31 = vpop.f32.mrb[58].mxu1 }
 0x2ae   :  { %v3327_v34 = vpop.f32.mrb[59].mxu1 }
 0x2b3   :  { %v3329_v39 = vpop.f32.mrb[60].mxu1 }
 0x2b4   :  { %v3331_v40 = vpop.f32.mrb[61].mxu1 }
 0x2b5   :  { %v3333_v41 = vpop.f32.mrb[62].mxu1 }
 0x2b6   :  { %v3335_v44 = vpop.f32.mrb[63].mxu1 }
 0x2bb   :  { %v2472_v49 = vpop.f32.mrb[48].mxu0 }
 0x2bc   :  { %v1380_v51 = vmax.f32 %v2440_v1, %v2472_v49  ;;  %v1315_v53 = vpop.f32.mrb[49].mxu0 }
 0x2bd   :  { %v1378_v54 = vmax.f32 %v1218_v6, %v1315_v53  ;;  %v2473_v59 = vpop.f32.mrb[50].mxu0 }
 0x2be   :  { %v1396_v63 = vsub.f32 %v2440_v1, %v1380_v51  ;;  %v1412_v0 = vsub.f32 %v2472_v49, %v1380_v51  ;;  %v1381_v5 = vmax.f32 %v2441_v4, %v2473_v59  ;;  %v1318_v18 = vpop.f32.mrb[51].mxu0 }
 0x2bf   :  { %v1394_v25 = vsub.f32 %v1218_v6, %v1378_v54  ;;  %v1410_v30 = vsub.f32 %v1315_v53, %v1378_v54  ;;  %v1379_v38 = vmax.f32 %v1221_v9, %v1318_v18 }
 0x2c0   :  { %v1430_v42 = vmul.f32 1.442695, %v1396_v63  ;;  %v1462_v47 = vmul.f32 1.442695, %v1412_v0  ;;  %v1397_v15 = vsub.f32 %v2441_v4, %v1381_v5  ;;  %v1413_v20 = vsub.f32 %v2473_v59, %v1381_v5 }
 0x2c1   :  { %v1426_v2 = vmul.f32 1.442695, %v1394_v25  ;;  %v1458_v57 = vmul.f32 1.442695, %v1410_v30  ;;  %v1395_v50 = vsub.f32 %v1221_v9, %v1379_v38  ;;  %v1411_v23 = vsub.f32 %v1318_v18, %v1379_v38 }
 0x2c2   :  { %2662 = vpow2.f32 %v1430_v42  ;;  %v1432_v35 = vmul.f32 1.442695, %v1397_v15  ;;  %v1464_v55 = vmul.f32 1.442695, %v1413_v20 }
 0x2c3   :  { %2664 = vpow2.f32 %v1462_v47  ;;  %v2476_v8 = vpop.f32.mrb[52].mxu0  ;;  %v1428_v28 = vmul.f32 1.442695, %v1395_v50  ;;  %v1460_v32 = vmul.f32 1.442695, %v1411_v23 }
 0x2c4   :  { %2666 = vpow2.f32 %v1426_v2  ;;  %v1384_v7 = vmax.f32 %v3313_v13, %v2476_v8  ;;  %v1331_v56 = vpop.f32.mrb[53].mxu0 }
 0x2c5   :  { %2668 = vpow2.f32 %v1458_v57  ;;  %v1382_v10 = vmax.f32 %v3315_v16, %v1331_v56  ;;  %v2477_v22 = vpop.f32.mrb[54].mxu0 }
 0x2c6   :  { %2670 = vpow2.f32 %v1432_v35  ;;  %v1400_v14 = vsub.f32 %v3313_v13, %v1384_v7  ;;  %v1416_v52 = vsub.f32 %v2476_v8, %v1384_v7  ;;  %v1385_v48 = vmax.f32 %v3317_v17, %v2477_v22  ;;  %v1334_v45 = vpop.f32.mrb[55].mxu0 }
 0x2c7   :  { %2672 = vpow2.f32 %v1464_v55  ;;  %v1398_v12 = vsub.f32 %v3315_v16, %v1382_v10  ;;  %v1414_v60 = vsub.f32 %v1331_v56, %v1382_v10  ;;  %v1383_v3 = vmax.f32 %v3319_v19, %v1334_v45 }
 0x2c8   :  { %2674 = vpow2.f32 %v1428_v28  ;;  %v1438_v27 = vmul.f32 1.442695, %v1400_v14  ;;  %v1470_v11 = vmul.f32 1.442695, %v1416_v52  ;;  %v1401_v58 = vsub.f32 %v3317_v17, %v1385_v48 }
 0x2c9   :  { %2676 = vpow2.f32 %v1460_v32  ;;  %v1434_v61 = vmul.f32 1.442695, %v1398_v12  ;;  %v1466_v1 = vmul.f32 1.442695, %v1414_v60  ;;  %v1417_v6 = vsub.f32 %v2477_v22, %v1385_v48 }
 0x2ca   :  { %2678 = vpow2.f32 %v1438_v27  ;;  %v1440_v4 = vmul.f32 1.442695, %v1401_v58  ;;  %v1399_v9 = vsub.f32 %v3319_v19, %v1383_v3  ;;  %v1415_v13 = vsub.f32 %v1334_v45, %v1383_v3 }
 0x2cb   :  { %2680 = vpow2.f32 %v1470_v11  ;;  %v1472_v21 = vmul.f32 1.442695, %v1417_v6  ;;  %v2480_v16 = vpop.f32.mrb[56].mxu0 }
 0x2cc   :  { %v3345_v24 = vpop.eup %2662  ;;  %2682 = vpow2.f32 %v1434_v61  ;;  %v1388_v33 = vmax.f32 %v3321_v26, %v2480_v16  ;;  %v1347_v37 = vpop.f32.mrb[57].mxu0  ;;  %v1436_v17 = vmul.f32 1.442695, %v1399_v9  ;;  %v1468_v46 = vmul.f32 1.442695, %v1415_v13 }
 0x2cd   :  { %v3348_v43 = vpop.eup %2664  ;;  %2684 = vpow2.f32 %v1466_v1  ;;  %v1386_v49 = vmax.f32 %v3323_v29, %v1347_v37  ;;  %v2481_v51 = vpop.f32.mrb[58].mxu0 }
 0x2ce   :  { %v3351_v53 = vpop.eup %2666  ;;  %v1492_v19 = vadd.f32 %v3348_v43, %v3345_v24  ;;  %2686 = vpow2.f32 %v1440_v4  ;;  %v1404_v54 = vsub.f32 %v3321_v26, %v1388_v33  ;;  %v1420_v59 = vsub.f32 %v2480_v16, %v1388_v33  ;;  %v3356_v62 = vpop.f32.mrb[59].mxu0 }
 0x2cf   :  { %v3358_v63 = vpop.eup %2668  ;;  %2688 = vpow2.f32 %v1472_v21  ;;  %v1402_v0 = vsub.f32 %v3323_v29, %v1386_v49  ;;  %v1418_v5 = vsub.f32 %v1347_v37, %v1386_v49  ;;  %v1389_v18 = vmax.f32 %v3325_v31, %v2481_v51 }
 0x2d0   :  { %v3362_v25 = vpop.eup %2670  ;;  %2690 = vrcp.f32 %v1492_v19  ;;  %v1490_v30 = vadd.f32 %v3358_v63, %v3351_v53  ;;  %v1446_v26 = vmul.f32 1.442695, %v1404_v54  ;;  %v1387_v20 = vmax.f32 %v3327_v34, %v3356_v62 }
 0x2d1   :  { %v3366_v38 = vpop.eup %2672  ;;  %2692 = vpow2.f32 %v1436_v17  ;;  %v1405_v42 = vsub.f32 %v3325_v31, %v1389_v18  ;;  %v1421_v15 = vsub.f32 %v2481_v51, %v1389_v18  ;;  %v1478_v57 = vmul.f32 1.442695, %v1420_v59 }
 0x2d2   :  { %v3369_v47 = vpop.eup %2674  ;;  %2694 = vrcp.f32 %v1490_v30  ;;  %v1493_v29 = vadd.f32 %v3366_v38, %v3362_v25  ;;  %v1442_v35 = vmul.f32 1.442695, %v1402_v0  ;;  %v1403_v55 = vsub.f32 %v3327_v34, %v1387_v20 }
 0x2d3   :  { %v3375_v2 = vpop.eup %2676  ;;  %2696 = vpow2.f32 %v1468_v46  ;;  %v2484_v50 = vpop.f32.mrb[60].mxu0  ;;  %v1419_v7 = vsub.f32 %v3356_v62, %v1387_v20  ;;  %v1474_v45 = vmul.f32 1.442695, %v1418_v5  ;;  %v1448_v1 = vmul.f32 1.442695, %v1405_v42 }
 0x2d4   :  { %v3377_v23 = vpop.eup %2678  ;;  %2698 = vrcp.f32 %v1493_v29  ;;  %v1491_v31 = vadd.f32 %v3375_v2, %v3369_v47  ;;  %v1363_v8 = vpop.f32.mrb[61].mxu0  ;;  %v1392_v56 = vmax.f32 %v3329_v39, %v2484_v50  ;;  %v1480_v9 = vmul.f32 1.442695, %v1421_v15 }
 0x2d5   :  { %v3382_v28 = vpop.eup %2680  ;;  %2700 = vpow2.f32 %v1446_v26  ;;  %v1390_v32 = vmax.f32 %v3331_v40, %v1363_v8  ;;  %v3387_v10 = vpop.f32.mrb[62].mxu0  ;;  %v1476_v37 = vmul.f32 1.442695, %v1419_v7 }
 0x2d6   :  { %v3389_v22 = vpop.eup %2682  ;;  %2702 = vrcp.f32 %v1491_v31  ;;  %v1496_v14 = vadd.f32 %v3382_v28, %v3377_v23  ;;  %v3395_v34 = vmax.f32 %v3333_v41, %v3387_v10  ;;  %v3397_v52 = vpop.f32.mrb[63].mxu0  ;;  %v1408_v12 = vsub.f32 %v3329_v39, %v1392_v56 }
 0x2d7   :  { %v3399_v48 = vpop.eup %2684  ;;  %2704 = vpow2.f32 %v1478_v57  ;;  %v1424_v60 = vsub.f32 %v2484_v50, %v1392_v56  ;;  %v1406_v11 = vsub.f32 %v3331_v40, %v1390_v32  ;;  %v1422_v58 = vsub.f32 %v1363_v8, %v1390_v32 }
 0x2d8   :  { %v3402_v3 = vpop.eup %2686  ;;  %2706 = vrcp.f32 %v1496_v14  ;;  %v1494_v27 = vadd.f32 %v3399_v48, %v3389_v22  ;;  %v1409_v6 = vsub.f32 %v3333_v41, %v3395_v34  ;;  %v1444_v40 = vmul.f32 1.442695, %v1403_v55 }
 0x2d9   :  { %v3407_v61 = vpop.eup %2688  ;;  %2708 = vpow2.f32 %v1442_v35  ;;  %v1425_v16 = vsub.f32 %v3387_v10, %v3395_v34  ;;  %v1391_v41 = vmax.f32 %v3335_v44, %v3397_v52  ;;  %v1454_v49 = vmul.f32 1.442695, %v1408_v12 }
 0x2da   :  { %v2691_v4 = vpop.eup %2690  ;;  %2710 = vrcp.f32 %v1494_v27  ;;  %v1497_v39 = vadd.f32 %v3407_v61, %v3402_v3  ;;  %v1486_v5 = vmul.f32 1.442695, %v1424_v60  ;;  %v1450_v18 = vmul.f32 1.442695, %v1406_v11 }
 0x2db   :  { %v3413_v13 = vpop.eup %2692  ;;  %v3416_v21 = vmul.f32 %v2691_v4, %v3348_v43  ;;  %2712 = vpow2.f32 %v1474_v45  ;;  %v1524_v17 = vmul.f32 %v2691_v4, %v3345_v24  ;;  %v1407_v59 = vsub.f32 %v3335_v44, %v1391_v41 }
 0x2dc   :  { %v2695_v33 = vpop.eup %2694  ;;  %2714 = vrcp.f32 %v1497_v39  ;;  %v1423_v62 = vsub.f32 %v3397_v52, %v1391_v41  ;;  %v1482_v30 = vmul.f32 1.442695, %v1422_v58  ;;  %v1456_v20 = vmul.f32 1.442695, %v1409_v6 }
 0x2dd   :  { %v3423_v46 = vpop.eup %2696  ;;  %2716 = vpow2.f32 %v1448_v1  ;;  %v1522_v43 = vmul.f32 %v2695_v33, %v3351_v53  ;;  %v3427_v51 = vmul.f32 %v2695_v33, %v3358_v63  ;;  %v1488_v8 = vmul.f32 1.442695, %v1425_v16 }
 0x2de   :  { %v2699_v19 = vpop.eup %2698  ;;  %v1495_v54 = vadd.f32 %v3423_v46, %v3413_v13  ;;  %2718 = vpow2.f32 %v1480_v9 }
 0x2df   :  { %v3433_v0 = vpop.eup %2700  ;;  %v3436_v24 = vmul.f32 %v2699_v19, %v3366_v38  ;;  %2720 = vpow2.f32 %v1444_v40  ;;  %v1525_v53 = vmul.f32 %v2699_v19, %v3362_v25 }
 0x2e0   :  { %v2703_v63 = vpop.eup %2702  ;;  %2722 = vrcp.f32 %v1495_v54 }
 0x2e1   :  { %v2705_v26 = vpop.eup %2704  ;;  %2724 = vpow2.f32 %v1476_v37  ;;  %v1523_v42 = vmul.f32 %v2703_v63, %v3369_v47  ;;  %v1555_v44 = vpack.c.bf16 %v1525_v53, %v1524_v17  ;;  %v3441_v29 = vmul.f32 %v2703_v63, %v3375_v2 }
 0x2e2   :  { %v2707_v15 = vpop.eup %2706  ;;  %v1500_v38 = vadd.f32 %v2705_v26, %v3433_v0  ;;  %2726 = vpow2.f32 %v1454_v49  ;;  %v1563_v25 = vpack.c.bf16 %v3436_v24, %v3416_v21 }
 0x2e3   :  { %v2709_v57 = vpop.eup %2708  ;;  %2728 = vpow2.f32 %v1486_v5  ;;  %v1554_v50 = vpack.c.bf16 %v1523_v42, %v1522_v43  ;;  %v1528_v31 = vmul.f32 %v2707_v15, %v3377_v23  ;;  %v1562_v47 = vpack.c.bf16 %v3441_v29, %v3427_v51 }
 0x2e4   :  { %v2711_v35 = vpop.eup %2710  ;;  %2730 = vrcp.f32 %v1500_v38  ;;  %v3450_v2 = vmul.f32 %v2707_v15, %v3382_v28  ;;  %v1452_v23 = vmul.f32 1.442695, %v1407_v59 }
 0x2e5   :  { %v2713_v55 = vpop.eup %2712  ;;  %2732 = vpow2.f32 %v1450_v18  ;;  %2488 = vmatprep.mubr.bf16.mxu1 %v1554_v50  ;;  %v1526_v7 = vmul.f32 %v2711_v35, %v3389_v22  ;;  %v3454_v56 = vmul.f32 %v2711_v35, %v3399_v48  ;;  %v1484_v22 = vmul.f32 1.442695, %v1423_v62 }
 0x2e6   :  { %v2715_v32 = vpop.eup %2714  ;;  %v1498_v10 = vadd.f32 %v2713_v55, %v2709_v57  ;;  %2734 = vpow2.f32 %v1482_v30  ;;  %2489 = vmatmul.mubr.bf16.vlgmr.msra.gmra.mrb[64].mxu1 %v1555_v44 }
 0x2e7   :  { %v2717_v14 = vpop.eup %2716  ;;  %2736 = vpow2.f32 %v1456_v20  ;;  %2505 = vmatpush3.bf16.msra.mxu1 %v3268_v36  ;;  %v1529_v28 = vmul.f32 %v2715_v32, %v3402_v3  ;;  %v3459_v34 = vmul.f32 %v2715_v32, %v3407_v61 }
 0x2e8   :  { %v2719_v52 = vpop.eup %2718  ;;  %2738 = vrcp.f32 %v1498_v10 }
 0x2e9   :  { %v2721_v45 = vpop.eup %2720  ;;  %v1501_v48 = vadd.f32 %v2719_v52, %v2717_v14  ;;  %2740 = vpow2.f32 %v1488_v8  ;;  %v1557_v12 = vpack.c.bf16 %v1529_v28, %v1528_v31  ;;  %v1565_v60 = vpack.c.bf16 %v3459_v34, %v3450_v2 }
 0x2ea   :  { %v2723_v27 = vpop.eup %2722  ;;  %2742 = vpow2.f32 %v1452_v23 }
 0x2eb   :  { %v2725_v11 = vpop.eup %2724  ;;  %2744 = vrcp.f32 %v1501_v48  ;;  %v1527_v36 = vmul.f32 %v2723_v27, %v3413_v13  ;;  %v1543_v3 = vmul.f32 %v2723_v27, %v3423_v46 }
 0x2ec   :  { %v2727_v58 = vpop.eup %2726  ;;  %v1499_v61 = vadd.f32 %v2725_v11, %v2721_v45  ;;  %2746 = vpow2.f32 %v1484_v22  ;;  %v2661_v22 = vld [vmem:[#allocation11 + $0x38] sm:$0xff]  }
 0x2ed   :  { %v2729_v1 = vpop.eup %2728  ;;  %v1556_v6 = vpack.c.bf16 %v1527_v36, %v1526_v7  ;;  %v1564_v4 = vpack.c.bf16 %v1543_v3, %v3454_v56  ;;  %2536 = vmatprep.subr.bf16.mxu0 %v2661_v22 }
 0x2ee   :  { %v2731_v39 = vpop.eup %2730  ;;  %2748 = vrcp.f32 %v1499_v61  ;;  %v1504_v9 = vadd.f32 %v2729_v1, %v2727_v58  ;;  %2537 = vmatpush3.bf16.msra.mxu0 %v2661_v22 }
 0x2ef   :  { %v2733_v40 = vpop.eup %2732  ;;  %2492 = vmatprep.mubr.bf16.mxu1 %v1556_v6  ;;  %v1532_v16 = vmul.f32 %v2731_v39, %v3433_v0  ;;  %v1548_v33 = vmul.f32 %v2731_v39, %v2705_v26 }
 0x2f0   :  { %v2735_v37 = vpop.eup %2734  ;;  %2750 = vrcp.f32 %v1504_v9  ;;  %2493 = vmatmul.mubr.bf16.gmra.mrb[68].mxu1 %v1557_v12 }
 0x2f1   :  { %v2737_v13 = vpop.eup %2736  ;;  %v1502_v41 = vadd.f32 %v2735_v37, %v2733_v40 }
 0x2f2   :  { %v2739_v17 = vpop.eup %2738 }
 0x2f3   :  { %v2741_v46 = vpop.eup %2740  ;;  %2752 = vrcp.f32 %v1502_v41  ;;  %v1530_v49 = vmul.f32 %v2739_v17, %v2709_v57  ;;  %v1546_v43 = vmul.f32 %v2739_v17, %v2713_v55 }
 0x2f4   :  { %v2743_v19 = vpop.eup %2742  ;;  %v1505_v54 = vadd.f32 %v2741_v46, %v2737_v13 }
 0x2f5   :  { %v2745_v59 = vpop.eup %2744 }
 0x2f6   :  { %v2747_v62 = vpop.eup %2746  ;;  %2754 = vrcp.f32 %v1505_v54  ;;  %v1533_v5 = vmul.f32 %v2745_v59, %v2717_v14  ;;  %v1549_v53 = vmul.f32 %v2745_v59, %v2719_v52 }
 0x2f7   :  { %v1503_v63 = vadd.f32 %v2747_v62, %v2743_v19 }
 0x2f8   :  { %v2749_v0 = vpop.eup %2748  ;;  %v1559_v18 = vpack.c.bf16 %v1533_v5, %v1532_v16  ;;  %v1567_v30 = vpack.c.bf16 %v1549_v53, %v1548_v33 }
 0x2f9   :  { %2756 = vrcp.f32 %v1503_v63  ;;  %v1531_v26 = vmul.f32 %v2749_v0, %v2721_v45  ;;  %v1547_v42 = vmul.f32 %v2749_v0, %v2725_v11 }
 0x2fa   :  { %v2751_v44 = vpop.eup %2750 }
 0x2fb   :  { %v1558_v15 = vpack.c.bf16 %v1531_v26, %v1530_v49  ;;  %v1536_v38 = vmul.f32 %v2751_v44, %v2727_v58  ;;  %v1566_v20 = vpack.c.bf16 %v1547_v42, %v1546_v43  ;;  %v1552_v57 = vmul.f32 %v2751_v44, %v2729_v1 }
 0x2fd   :  { %v2753_v50 = vpop.eup %2752  ;;  %2496 = vmatprep.mubr.bf16.mxu1 %v1558_v15 }
 0x2fe   :  { %2497 = vmatmul.mubr.bf16.gmra.mrb[72].mxu1 %v1559_v18  ;;  %v1534_v31 = vmul.f32 %v2753_v50, %v2733_v40  ;;  %v1550_v35 = vmul.f32 %v2753_v50, %v2735_v37 }
 0x300   :  { %v2755_v55 = vpop.eup %2754 }
 0x301   :  { %v1537_v8 = vmul.f32 %v2755_v55, %v2737_v13  ;;  %v1553_v7 = vmul.f32 %v2755_v55, %v2741_v46 }
 0x303   :  { %v2757_v56 = vpop.eup %2756  ;;  %v1561_v32 = vpack.c.bf16 %v1537_v8, %v1536_v38  ;;  %v1569_v10 = vpack.c.bf16 %v1553_v7, %v1552_v57 }
 0x304   :  { %v1535_v23 = vmul.f32 %v2757_v56, %v2743_v19  ;;  %v1551_v14 = vmul.f32 %v2757_v56, %v2747_v62 }
 0x306   :  { %v1560_v28 = vpack.c.bf16 %v1535_v23, %v1534_v31  ;;  %v1568_v52 = vpack.c.bf16 %v1551_v14, %v1550_v35 }
 0x308   :  { %2500 = vmatprep.mubr.bf16.mxu1 %v1560_v28 }
 0x309   :  { %2501 = vmatmul.mubr.bf16.gmra.mrb[76].mxu1 %v1561_v32 }
 0x30a   :  { %2506 = vmatprep.mubr.bf16.mxu1 %v1562_v47 }
 0x311   :  { %2507 = vmatmul.mubr.bf16.vlgmr.msra.gmra.mrb[80].mxu1 %v1563_v25 }
 0x312   :  { %2510 = vmatprep.mubr.bf16.mxu1 %v1564_v4 }
 0x319   :  { %2511 = vmatmul.mubr.bf16.gmra.mrb[84].mxu1 %v1565_v60 }
 0x31a   :  { %2514 = vmatprep.mubr.bf16.mxu1 %v1566_v20  ;;  %v3479_v20 = vld [vmem:[%s3534_s9] ss:$0 sm:$0xff]  ;;  %s2931_s9 = smov [#allocation13]  }
 0x31b   :  { %s2049_s28 = sshll.u32 %s2931_s9, 4  ;;  %s2050_s28 = int_to_ptr.vmem [resolvable:$true] %s2049_s28 }
 0x31c   :  { %s2890_s29 = scalar_lea.vmem %s2050_s28, 4096  ;;  %p2895_p7 = scmp.lt.s32.totalorder %s2050_s28, %s2050_s28 }
 0x31d   :  { %p2891_p6 = scmp.ne.s32.totalorder %s2050_s28, %s2890_s29  ;;  %p2896_p8 = scmp.lt.s32.totalorder %s2890_s29, %s2890_s29 }
 0x31f   :  { %p2897_p9 = por %p2896_p8, %p2895_p7 }
 0x321   :  { %2515 = vmatmul.mubr.bf16.gmra.mrb[88].mxu1 %v1567_v30  ;;  %p2898_p10 = pnand %p2897_p9, %p2891_p6 }
 0x322   :  { %2518 = vmatprep.mubr.bf16.mxu1 %v1568_v52 }
 0x329   :  { %2519 = vmatmul.mubr.bf16.gmra.mrb[92].mxu1 %v1569_v10 }
 0x3b9   :  { %v2490_v45 = vpop.f32.mrb[64].mxu1 }
 0x3ba   :  { %v1604_v48 = vpop.f32.mrb[65].mxu1 }
 0x3bb   :  { %v2491_v51 = vpop.f32.mrb[66].mxu1 }
 0x3bc   :  { %v1765_v29 = vpack.c.bf16 %v2491_v51, %v2490_v45  ;;  %v1607_v47 = vpop.f32.mrb[67].mxu1 }
 0x3bd   :  { %v1764_v12 = vpack.c.bf16 %v1607_v47, %v1604_v48 }
 0x3bf   :  { %2538 = vmatprep.mubr.bf16.mxu0 %v1764_v12 }
 0x3c0   :  { %2539 = vmatmul.mubr.bf16.vlgmr.msra.gmra.mrb[64].mxu0 %v1765_v29 }
 0x3c3   :  { %v2494_v21 = vpop.f32.mrb[68].mxu1 }
 0x3c4   :  { %v1620_v24 = vpop.f32.mrb[69].mxu1 }
 0x3c5   :  { %v2495_v25 = vpop.f32.mrb[70].mxu1 }
 0x3c6   :  { %v1767_v2 = vpack.c.bf16 %v2495_v25, %v2494_v21  ;;  %v1623_v34 = vpop.f32.mrb[71].mxu1 }
 0x3c7   :  { %v1766_v60 = vpack.c.bf16 %v1623_v34, %v1620_v24 }
 0x3c9   :  { %2542 = vmatprep.mubr.bf16.mxu0 %v1766_v60 }
 0x3ca   :  { %2543 = vmatmul.mubr.bf16.gmra.mrb[68].mxu0 %v1767_v2 }
 0x3d1   :  { %v2498_v27 = vpop.f32.mrb[72].mxu1 }
 0x3d2   :  { %v1636_v11 = vpop.f32.mrb[73].mxu1 }
 0x3d3   :  { %v2499_v36 = vpop.f32.mrb[74].mxu1 }
 0x3d4   :  { %v1769_v3 = vpack.c.bf16 %v2499_v36, %v2498_v27  ;;  %v1639_v58 = vpop.f32.mrb[75].mxu1 }
 0x3d5   :  { %v1768_v61 = vpack.c.bf16 %v1639_v58, %v1636_v11 }
 0x3d7   :  { %2546 = vmatprep.mubr.bf16.mxu0 %v1768_v61 }
 0x3d8   :  { %2547 = vmatmul.mubr.bf16.gmra.mrb[72].mxu0 %v1769_v3 }
 0x3dc   :  { %v2502_v1 = vpop.f32.mrb[76].mxu1 }
 0x3dd   :  { %v1652_v6 = vpop.f32.mrb[77].mxu1 }
 0x3de   :  { %v2503_v4 = vpop.f32.mrb[78].mxu1 }
 0x3df   :  { %v1771_v39 = vpack.c.bf16 %v2503_v4, %v2502_v1  ;;  %v1655_v9 = vpop.f32.mrb[79].mxu1 }
 0x3e0   :  { %v1770_v40 = vpack.c.bf16 %v1655_v9, %v1652_v6 }
 0x3e2   :  { %2550 = vmatprep.mubr.bf16.mxu0 %v1770_v40 }
 0x3e3   :  { %2551 = vmatmul.mubr.bf16.gmra.mrb[76].mxu0 %v1771_v39 }
 0x3e4   :  { %v2508_v16 = vpop.f32.mrb[80].mxu1 }
 0x3e5   :  { %v1701_v33 = vpop.f32.mrb[81].mxu1 }
 0x3e6   :  { %v2509_v37 = vpop.f32.mrb[82].mxu1 }
 0x3e7   :  { %v1773_v13 = vpack.c.bf16 %v2509_v37, %v2508_v16  ;;  %v1704_v41 = vpop.f32.mrb[83].mxu1 }
 0x3e8   :  { %v1772_v17 = vpack.c.bf16 %v1704_v41, %v1701_v33 }
 0x3ea   :  { %2554 = vmatprep.mubr.bf16.mxu0 %v1772_v17 }
 0x3eb   :  { %2555 = vmatmul.mubr.bf16.gmra.mrb[80].mxu0 %v1773_v13 }
 0x3ec   :  { %v2512_v46 = vpop.f32.mrb[84].mxu1 }
 0x3ed   :  { %v1717_v49 = vpop.f32.mrb[85].mxu1 }
 0x3ee   :  { %v2513_v43 = vpop.f32.mrb[86].mxu1 }
 0x3ef   :  { %v1775_v19 = vpack.c.bf16 %v2513_v43, %v2512_v46  ;;  %v1720_v54 = vpop.f32.mrb[87].mxu1 }
 0x3f0   :  { %v1774_v59 = vpack.c.bf16 %v1720_v54, %v1717_v49 }
 0x3f2   :  { %2558 = vmatprep.mubr.bf16.mxu0 %v1774_v59 }
 0x3f3   :  { %2559 = vmatmul.mubr.bf16.gmra.mrb[84].mxu0 %v1775_v19 }
 0x3f4   :  { %v2516_v62 = vpop.f32.mrb[88].mxu1 }
 0x3f5   :  { %v1733_v5 = vpop.f32.mrb[89].mxu1 }
 0x3f6   :  { %v2517_v53 = vpop.f32.mrb[90].mxu1 }
 0x3f7   :  { %v1777_v63 = vpack.c.bf16 %v2517_v53, %v2516_v62  ;;  %v1736_v0 = vpop.f32.mrb[91].mxu1 }
 0x3f8   :  { %v1776_v18 = vpack.c.bf16 %v1736_v0, %v1733_v5 }
 0x3fa   :  { %2562 = vmatprep.mubr.bf16.mxu0 %v1776_v18 }
 0x3fb   :  { %2563 = vmatmul.mubr.bf16.gmra.mrb[88].mxu0 %v1777_v63 }
 0x3fc   :  { %v2520_v30 = vpop.f32.mrb[92].mxu1 }
 0x3fd   :  { %v1749_v26 = vpop.f32.mrb[93].mxu1 }
 0x3fe   :  { %v2521_v42 = vpop.f32.mrb[94].mxu1 }
 0x3ff   :  { %v1779_v44 = vpack.c.bf16 %v2521_v42, %v2520_v30  ;;  %v1752_v15 = vpop.f32.mrb[95].mxu1 }
 0x400   :  { %v1778_v38 = vpack.c.bf16 %v1752_v15, %v1749_v26 }
 0x402   :  { %2566 = vmatprep.mubr.bf16.mxu0 %v1778_v38 }
 0x403   :  { %2567 = vmatmul.mubr.bf16.gmra.mrb[92].mxu0 %v1779_v44 }
 0x493   :  { %v2540_v57 = vpop.f32.mrb[64].mxu0 }
 0x494   :  { %v1894_v50 = vadd.f32 %v2540_v57, %v3479_v20  ;;  %v1885_v31 = vpop.f32.mrb[65].mxu0 }
 0x495   :  { %v1886_v35 = vadd.f32 %v3479_v20, %v1885_v31  ;;  %v2541_v55 = vpop.f32.mrb[66].mxu0 }
 0x496   :  { %2014 = vst [vmem:[#allocation13 + $0x10] sm:$0xff] %v1894_v50  ;;  %v1897_v8 = vadd.f32 %v2541_v55, %v3479_v20  ;;  %v1888_v7 = vpop.f32.mrb[67].mxu0 }
 0x497   :  { %2012 = vst [vmem:[#allocation13] sm:$0xff] %v1886_v35  ;;  %v1889_v56 = vadd.f32 %v3479_v20, %v1888_v7 }
 0x498   :  { %2015 = vst [vmem:[#allocation13 + $0x18] sm:$0xff] %v1897_v8 }
 0x499   :  { %2013 = vst [vmem:[#allocation13 + $0x8] sm:$0xff] %v1889_v56 }
 0x49d   :  { %v2544_v32 = vpop.f32.mrb[68].mxu0 }
 0x49e   :  { %v1910_v10 = vadd.f32 %v2544_v32, %v3479_v20  ;;  %v1901_v23 = vpop.f32.mrb[69].mxu0 }
 0x49f   :  { %v1902_v14 = vadd.f32 %v3479_v20, %v1901_v23  ;;  %v2545_v28 = vpop.f32.mrb[70].mxu0 }
 0x4a0   :  { %2018 = vst [vmem:[#allocation13 + $0x30] sm:$0xff] %v1910_v10  ;;  %v1913_v52 = vadd.f32 %v2545_v28, %v3479_v20  ;;  %v1904_v22 = vpop.f32.mrb[71].mxu0 }
 0x4a1   :  { %2016 = vst [vmem:[#allocation13 + $0x20] sm:$0xff] %v1902_v14  ;;  %v1905_v45 = vadd.f32 %v3479_v20, %v1904_v22 }
 0x4a2   :  { %2019 = vst [vmem:[#allocation13 + $0x38] sm:$0xff] %v1913_v52 }
 0x4a3   :  { %2017 = vst [vmem:[#allocation13 + $0x28] sm:$0xff] %v1905_v45 }
 0x4ab   :  { %v2548_v48 = vpop.f32.mrb[72].mxu0 }
 0x4ac   :  { %v1926_v51 = vadd.f32 %v2548_v48, %v3479_v20  ;;  %v1917_v29 = vpop.f32.mrb[73].mxu0 }
 0x4ad   :  { %v1918_v47 = vadd.f32 %v3479_v20, %v1917_v29  ;;  %v2549_v12 = vpop.f32.mrb[74].mxu0 }
 0x4ae   :  { %2022 = vst [vmem:[#allocation13 + $0x50] sm:$0xff] %v1926_v51  ;;  %v1929_v21 = vadd.f32 %v2549_v12, %v3479_v20  ;;  %v1920_v24 = vpop.f32.mrb[75].mxu0 }
 0x4af   :  { %2020 = vst [vmem:[#allocation13 + $0x40] sm:$0xff] %v1918_v47  ;;  %v1921_v25 = vadd.f32 %v3479_v20, %v1920_v24 }
 0x4b0   :  { %2023 = vst [vmem:[#allocation13 + $0x58] sm:$0xff] %v1929_v21 }
 0x4b1   :  { %2021 = vst [vmem:[#allocation13 + $0x48] sm:$0xff] %v1921_v25 }
 0x4b6   :  { %v2552_v2 = vpop.f32.mrb[76].mxu0 }
 0x4b7   :  { %v1942_v34 = vadd.f32 %v2552_v2, %v3479_v20  ;;  %v1933_v60 = vpop.f32.mrb[77].mxu0 }
 0x4b8   :  { %v1934_v27 = vadd.f32 %v3479_v20, %v1933_v60  ;;  %v2553_v11 = vpop.f32.mrb[78].mxu0 }
 0x4b9   :  { %2026 = vst [vmem:[#allocation13 + $0x70] sm:$0xff] %v1942_v34  ;;  %v1945_v36 = vadd.f32 %v2553_v11, %v3479_v20  ;;  %v1936_v3 = vpop.f32.mrb[79].mxu0 }
 0x4ba   :  { %2024 = vst [vmem:[#allocation13 + $0x60] sm:$0xff] %v1934_v27  ;;  %v1937_v58 = vadd.f32 %v3479_v20, %v1936_v3 }
 0x4bb   :  { %2027 = vst [vmem:[#allocation13 + $0x78] sm:$0xff] %v1945_v36 }
 0x4bc   :  { %2025 = vst [vmem:[#allocation13 + $0x68] sm:$0xff] %v1937_v58 }
 0x4be   :  { %v2556_v61 = vpop.f32.mrb[80].mxu0 }
 0x4bf   :  { %v1958_v1 = vadd.f32 %v2556_v61, %v3479_v20  ;;  %v1949_v6 = vpop.f32.mrb[81].mxu0 }
 0x4c0   :  { %v1950_v4 = vadd.f32 %v3479_v20, %v1949_v6  ;;  %v2557_v39 = vpop.f32.mrb[82].mxu0 }
 0x4c1   :  { %2030 = vst [vmem:[#allocation13 + $0x90] sm:$0xff] %v1958_v1  ;;  %v1961_v9 = vadd.f32 %v2557_v39, %v3479_v20  ;;  %v1952_v40 = vpop.f32.mrb[83].mxu0 }
 0x4c2   :  { %2028 = vst [vmem:[#allocation13 + $0x80] sm:$0xff] %v1950_v4  ;;  %v1953_v16 = vadd.f32 %v3479_v20, %v1952_v40 }
 0x4c3   :  { %2031 = vst [vmem:[#allocation13 + $0x98] sm:$0xff] %v1961_v9 }
 0x4c4   :  { %2029 = vst [vmem:[#allocation13 + $0x88] sm:$0xff] %v1953_v16 }
 0x4c6   :  { %v2560_v33 = vpop.f32.mrb[84].mxu0 }
 0x4c7   :  { %v1974_v37 = vadd.f32 %v2560_v33, %v3479_v20  ;;  %v1965_v13 = vpop.f32.mrb[85].mxu0 }
 0x4c8   :  { %v1966_v41 = vadd.f32 %v3479_v20, %v1965_v13  ;;  %v2561_v17 = vpop.f32.mrb[86].mxu0 }
 0x4c9   :  { %2034 = vst [vmem:[#allocation13 + $0xb0] sm:$0xff] %v1974_v37  ;;  %v1977_v46 = vadd.f32 %v2561_v17, %v3479_v20  ;;  %v1968_v49 = vpop.f32.mrb[87].mxu0 }
 0x4ca   :  { %2032 = vst [vmem:[#allocation13 + $0xa0] sm:$0xff] %v1966_v41  ;;  %v1969_v43 = vadd.f32 %v3479_v20, %v1968_v49 }
 0x4cb   :  { %2035 = vst [vmem:[#allocation13 + $0xb8] sm:$0xff] %v1977_v46 }
 0x4cc   :  { %2033 = vst [vmem:[#allocation13 + $0xa8] sm:$0xff] %v1969_v43 }
 0x4ce   :  { %v2564_v19 = vpop.f32.mrb[88].mxu0 }
 0x4cf   :  { %v1990_v54 = vadd.f32 %v2564_v19, %v3479_v20  ;;  %v1981_v59 = vpop.f32.mrb[89].mxu0 }
 0x4d0   :  { %v1982_v62 = vadd.f32 %v3479_v20, %v1981_v59  ;;  %v2565_v5 = vpop.f32.mrb[90].mxu0 }
 0x4d1   :  { %2038 = vst [vmem:[#allocation13 + $0xd0] sm:$0xff] %v1990_v54  ;;  %v1993_v53 = vadd.f32 %v2565_v5, %v3479_v20  ;;  %v1984_v63 = vpop.f32.mrb[91].mxu0 }
 0x4d2   :  { %2036 = vst [vmem:[#allocation13 + $0xc0] sm:$0xff] %v1982_v62  ;;  %v1985_v0 = vadd.f32 %v3479_v20, %v1984_v63 }
 0x4d3   :  { %2039 = vst [vmem:[#allocation13 + $0xd8] sm:$0xff] %v1993_v53 }
 0x4d4   :  { %2037 = vst [vmem:[#allocation13 + $0xc8] sm:$0xff] %v1985_v0 }
 0x4d6   :  { %v2568_v18 = vpop.f32.mrb[92].mxu0 }
 0x4d7   :  { %v2006_v30 = vadd.f32 %v2568_v18, %v3479_v20  ;;  %v1997_v26 = vpop.f32.mrb[93].mxu0 }
 0x4d8   :  { %v1998_v42 = vadd.f32 %v3479_v20, %v1997_v26  ;;  %v2569_v44 = vpop.f32.mrb[94].mxu0 }
 0x4d9   :  { %2042 = vst [vmem:[#allocation13 + $0xf0] sm:$0xff] %v2006_v30  ;;  %v2009_v15 = vadd.f32 %v2569_v44, %v3479_v20  ;;  %v2000_v38 = vpop.f32.mrb[95].mxu0 }
 0x4da   :  { %2040 = vst [vmem:[#allocation13 + $0xe0] sm:$0xff] %v1998_v42  ;;  %v2001_v57 = vadd.f32 %v3479_v20, %v2000_v38 }
 0x4db   :  { %2043 = vst [vmem:[#allocation13 + $0xf8] sm:$0xff] %v2009_v15 }
 0x4dc   :  { %2041 = vst [vmem:[#allocation13 + $0xe8] sm:$0xff] %v2001_v57 }
 0x4dd   :  { %2901 = shalt.err (!%p2898_p10)
}
 0x4de   :  { %s2902_s4 = scalar_lea.hbm %s3535_s10, 4096 }
 0x4df   :  { %p2903_p11 = scmp.ne.s32.totalorder %s3535_s10, %s2902_s4  ;;  %p2906_p12 = scmp.lt.u32.totalorder %s2902_s4, %s3535_s10 }
 0x4e1   :  { %p2908_p13 = pnand %p2906_p12, %p2903_p11 }
 0x4e3   :  { %2911 = shalt.err (!%p2908_p13)
}
 0x4e4   :  { %s2932_s22 = smov 128   ;;  %s2933_s15 = smov 8  }
 0x4e5   :  { %2055 = dma.vmem_to_hbm [thread:$0]  %s2050_s28, 4096, %s3535_s10, [#allocation4], %s2932_s22, %s2932_s22, %s2933_s15  }
 0x4e6   :  { %2920 = dma.done.wait [#allocation4], 4096  }
 0x4e7   :  { %2921 = vsyncadd [#allocation4], 4294963200 }
 0x4e8   :  { %2059 = vsyncpa [#allocation3], 1 }
 0x4e9   :  { %2060 = vsyncpa [#allocation6], 1 }
 0x4ea   :  { %2061 = vsyncpa [#allocation9], 1 }
 0x4eb   :  { %2062 = vsyncpa [#allocation12], 1 }
 0x4ec   :  { %2063 = vsyncpa [#allocation4], 1 }

</bundles_post_ra>
